<compile_context>
chip_gen: v5e
topology: v5e:2x2
jax: 0.10.0
libtpu: 0.0.40
codegen_flags: <defaults>
</compile_context>

<pallas_src>
import functools

import jax
import jax.numpy as jnp
from jax.experimental import pallas as pl
from jax.experimental.pallas import tpu as pltpu


def _round_up(a, b):
    return (a + b - 1) // b * b


# ---------------------------------------------------------------------------
# Fused conv-as-GEMM Pallas kernel
#   patches [P, M, K] (bf16) @ weights [P, K, Coutp] (bf16) + bias [1, Coutp] (f32)
#   grid = (P, M/tm, K/tk); f32 VMEM accumulator; epilogue on last K step.
# ---------------------------------------------------------------------------
def _conv_mm_kernel(p_ref, w_ref, b_ref, o_ref, acc_ref, *, act_in, act_out):
    kk = pl.program_id(2)

    @pl.when(kk == 0)
    def _():
        acc_ref[...] = jnp.zeros_like(acc_ref)

    p = p_ref[0]
    if act_in == "leaky_relu":          # fused downrelu (elementwise, VPU has slack)
        p = jnp.where(p >= 0, p, 0.2 * p)
    acc_ref[...] += jnp.dot(p, w_ref[0], preferred_element_type=jnp.float32)

    @pl.when(kk == pl.num_programs(2) - 1)
    def _():
        r = acc_ref[...] + b_ref[...]   # f32 epilogue
        if act_out == "relu":
            r = jnp.maximum(r, 0.0)
        o_ref[0] = r.astype(o_ref.dtype)


def pallas_conv_matmul(patches, w, bias, *, act_in=None, act_out=None,
                       out_dtype=jnp.float32, tm=256):
    """out[p] = act_out(act_in(patches[p]) @ w[p] + bias), batched over phase p.

    patches: [P, M, K], w: [P, K, Cout], bias: [Cout]. Returns [P, M, Cout]."""
    P, M, K = patches.shape
    cout = w.shape[2]
    coutp = _round_up(cout, 128)                 # lane-dense output stores
    kp = _round_up(K, 128)
    tk = 512 if kp % 512 == 0 else (256 if kp % 256 == 0 else 128)
    mp = _round_up(M, tm)

    # Pad (zero rows/cols contribute nothing) and cast MXU operands to bf16.
    p_pad = jnp.pad(patches, ((0, 0), (0, mp - M), (0, kp - K))).astype(jnp.bfloat16)
    w_pad = jnp.pad(w, ((0, 0), (0, kp - K), (0, coutp - cout))).astype(jnp.bfloat16)
    b_pad = jnp.pad(bias.astype(jnp.float32), (0, coutp - cout)).reshape(1, coutp)

    grid = (P, mp // tm, kp // tk)
    out_bytes = P * mp * coutp * jnp.dtype(out_dtype).itemsize
    cost = pl.CostEstimate(
        flops=2 * P * mp * kp * coutp,
        transcendentals=0,
        bytes_accessed=2 * p_pad.size + 2 * w_pad.size + 4 * b_pad.size + out_bytes)

    out = pl.pallas_call(
        functools.partial(_conv_mm_kernel, act_in=act_in, act_out=act_out),
        out_shape=jax.ShapeDtypeStruct((P, mp, coutp), out_dtype),
        grid=grid,
        in_specs=[
            pl.BlockSpec((1, tm, tk), lambda p, i, k: (p, i, k)),
            pl.BlockSpec((1, tk, coutp), lambda p, i, k: (p, k, 0)),
            pl.BlockSpec((1, coutp), lambda p, i, k: (0, 0)),
        ],
        out_specs=pl.BlockSpec((1, tm, coutp), lambda p, i, k: (p, i, 0)),
        scratch_shapes=[pltpu.VMEM((tm, coutp), jnp.float32)],
        compiler_params=pltpu.CompilerParams(
            dimension_semantics=("parallel", "parallel", "arbitrary"),
            vmem_limit_bytes=48 * 1024 * 1024),
        cost_estimate=cost,
    )(p_pad, w_pad, b_pad)
    return out[:, :M, :cout]


# ---------------------------------------------------------------------------
# Conv lowering glue (plain JAX slicing / reshapes, channel-last)
# TODO(synk): fuse patch extraction (im2col) into the Pallas kernel as a direct-conv
# kernel with halo DMA to remove the expanded-patch HBM traffic entirely.
# ---------------------------------------------------------------------------
def _im2col3d_cl(xp, k, stride):
    """xp: [N, D, H, W, C] already padded -> ([N*Do*Ho*Wo, k^3*C], (Do, Ho, Wo))."""
    N, D, H, W, C = xp.shape
    Do = (D - k) // stride + 1
    Ho = (H - k) // stride + 1
    Wo = (W - k) // stride + 1
    cols = []
    for kd in range(k):
        for kh in range(k):
            for kw in range(k):
                cols.append(xp[:, kd:kd + stride * Do:stride,
                               kh:kh + stride * Ho:stride,
                               kw:kw + stride * Wo:stride, :])
    p = jnp.stack(cols, axis=4)                      # [N, Do, Ho, Wo, k^3, C]
    return p.reshape(N * Do * Ho * Wo, k ** 3 * C), (Do, Ho, Wo)


def downconv_leakyrelu_relu(x, w, b, out_dtype=jnp.bfloat16):
    """LeakyReLU(0.2) + Conv3d(k=4, s=2, p=1) + ReLU, all fused into one GEMM pass.
    x: [N, Cin, D, H, W]; w: [Cout, Cin, 4,4,4]; b: [Cout].
    Returns channel-last [N, Do, Ho, Wo, Cout]."""
    N, cin = x.shape[0], x.shape[1]
    cout, k = w.shape[0], w.shape[2]
    x_cl = jnp.transpose(x, (0, 2, 3, 4, 1))                       # NDHWC once
    xp = jnp.pad(x_cl, ((0, 0), (1, 1), (1, 1), (1, 1), (0, 0)))
    patches, (Do, Ho, Wo) = _im2col3d_cl(xp, k, 2)                 # [M, k^3*Cin]
    wt = w.transpose(2, 3, 4, 1, 0).reshape(k ** 3 * cin, cout)    # tap-major, cin-minor
    out = pallas_conv_matmul(patches[None], wt[None], b,
                             act_in="leaky_relu", act_out="relu",
                             out_dtype=out_dtype)
    return out[0].reshape(N, Do, Ho, Wo, cout)


# ConvTranspose3d(k=4, s=2, p=1) sub-pixel decomposition:
#   output o = 2*j + phi; contributions per dim: (padded-input offset, kernel index)
_TAPS = {0: ((0, 3), (1, 1)),    # phi = 0 (even outputs)
         1: ((1, 2), (2, 0))}    # phi = 1 (odd outputs)


def upconv_transpose_subpixel(y_cl, w, b, out_dtype=jnp.float32):
    """ConvTranspose3d(k=4, s=2, p=1) via 8-phase (2x2x2-tap) decomposition.
    y_cl: [N, D, H, W, Cin] channel-last; w: [Cin, Cout, 4,4,4]; b: [Cout].
    Returns NCDHW [N, Cout, 2D, 2H, 2W]."""
    N, D, H, W, cin = y_cl.shape
    cout = w.shape[1]
    yp = jnp.pad(y_cl, ((0, 0), (1, 1), (1, 1), (1, 1), (0, 0)))
    patch_list, w_list = [], []
    for pd in (0, 1):
        for ph in (0, 1):
            for pw in (0, 1):
                cols, wts = [], []
                for (td, kd) in _TAPS[pd]:
                    for (th, kh) in _TAPS[ph]:
                        for (tw, kw) in _TAPS[pw]:
                            cols.append(yp[:, td:td + D, th:th + H, tw:tw + W, :])
                            wts.append(w[:, :, kd, kh, kw])        # [Cin, Cout]
                cp = jnp.stack(cols, axis=4)                       # [N,D,H,W,8,Cin]
                patch_list.append(cp.reshape(N * D * H * W, 8 * cin))
                w_list.append(jnp.stack(wts, axis=0).reshape(8 * cin, cout))
    patches = jnp.stack(patch_list, axis=0)          # [8, M, 8*Cin]
    w_all = jnp.stack(w_list, axis=0)                # [8, 8*Cin, Cout]
    out = pallas_conv_matmul(patches, w_all, b, out_dtype=out_dtype)   # [8, M, Cout]
    out = out.reshape(2, 2, 2, N, D, H, W, cout)
    # interleave phases: z[n, c, 2jd+pd, 2jh+ph, 2jw+pw] = out[pd, ph, pw, n, jd, jh, jw, c]
    z = out.transpose(3, 7, 4, 0, 5, 1, 6, 2).reshape(N, cout, 2 * D, 2 * H, 2 * W)
    return z


# ---------------------------------------------------------------------------
# UnetBlock (innermost) forward
# ---------------------------------------------------------------------------
def unet_block_innermost_forward(x, params):
    # downrelu + downconv + uprelu fused into one Pallas GEMM pass, bf16 intermediate
    y = downconv_leakyrelu_relu(x, params["w_down"], params["b_down"],
                                out_dtype=jnp.bfloat16)
    # upconv (ConvTranspose3d) via sub-pixel decomposition
    z = upconv_transpose_subpixel(y, params["w_up"], params["b_up"],
                                  out_dtype=x.dtype)
    # TODO(synk): fuse the skip concat by writing z into a channel-offset slice of a
    # preallocated NCDHW output (input_output_aliases); kept as an XLA concat here.
    return jnp.concatenate([z, x], axis=1)


# pure-JAX reference (XLA convs, f32) used only as a correctness cross-check
def reference_forward(x, params):
    a = jnp.where(x >= 0, x, 0.2 * x)
    dn = jax.lax.conv_general_dilated(
        a, params["w_down"], window_strides=(2, 2, 2), padding=[(1, 1)] * 3,
        dimension_numbers=("NCDHW", "OIDHW", "NCDHW"))
    y = jnp.maximum(dn + params["b_down"].reshape(1, -1, 1, 1, 1), 0.0)
    w_eq = jnp.flip(params["w_up"], axis=(2, 3, 4)).transpose(1, 0, 2, 3, 4)
    up = jax.lax.conv_general_dilated(
        y, w_eq, window_strides=(1, 1, 1), padding=[(2, 2)] * 3,
        lhs_dilation=(2, 2, 2),
        dimension_numbers=("NCDHW", "OIDHW", "NCDHW"))
    z = up + params["b_up"].reshape(1, -1, 1, 1, 1)
    return jnp.concatenate([z, x], axis=1)


if __name__ == "__main__":
    # small config: N=2, input_nc=4, inner_nc=8, outer_nc=4, D=H=W=16
    N, input_nc, inner_nc, outer_nc = 2, 4, 8, 4
    D = H = W = 16
    k = 4

    key = jax.random.PRNGKey(0)
    kx, k1, k2, k3, k4 = jax.random.split(key, 5)
    x = jax.random.normal(kx, (N, input_nc, D, H, W), jnp.float32)
    params = {
        "w_down": 0.05 * jax.random.normal(k1, (inner_nc, input_nc, k, k, k), jnp.float32),
        "b_down": 0.05 * jax.random.normal(k2, (inner_nc,), jnp.float32),
        "w_up":   0.05 * jax.random.normal(k3, (inner_nc, outer_nc, k, k, k), jnp.float32),
        "b_up":   0.05 * jax.random.normal(k4, (outer_nc,), jnp.float32),
    }

    fwd = jax.jit(unet_block_innermost_forward)
    out = jax.block_until_ready(fwd(x, params))
    assert out.shape == (N, outer_nc + input_nc, D, H, W), out.shape

    ref = jax.block_until_ready(reference_forward(x, params))
    # bf16 MXU operands vs f32 reference -> slightly looser tolerance than pure f32
    assert jnp.allclose(out, ref, atol=4e-2, rtol=4e-2), \
        float(jnp.max(jnp.abs(out - ref)))

    # TODO(synk): outermost / non-innermost variants (submodule recursion, Tanh,
    # norm layers, dropout) are not instantiated here; this covers the innermost block.
    print("KERNEL_OK")
</pallas_src>

<mosaic_0001>
module attributes {stable_mosaic.version = 11 : i64} {
  func.func @_conv_mm_kernel(%arg0: i32, %arg1: i32, %arg2: i32, %arg3: memref<1x256x256xbf16, #tpu.memory_space<vmem>>, %arg4: memref<1x256x128xbf16, #tpu.memory_space<vmem>>, %arg5: memref<1x128xf32, #tpu.memory_space<vmem>>, %arg6: memref<1x256x128xbf16, #tpu.memory_space<vmem>>, %arg7: memref<256x128xf32, #tpu.memory_space<vmem>>) attributes {dimension_semantics = [#tpu.dimension_semantics<parallel>, #tpu.dimension_semantics<parallel>, #tpu.dimension_semantics<arbitrary>], iteration_bounds = array<i64: 1, 4, 1>, scalar_prefetch = 0 : i64, scratch_operands = 1 : i64, tpu.core_type = #tpu.core_type<tc>, window_params = [{transform_indices = @transform_0, window_bounds = array<i64: 1, 256, 256>}, {transform_indices = @transform_1, window_bounds = array<i64: 1, 256, 128>}, {pipeline_mode = #tpu.pipeline_mode<synchronous>, transform_indices = @transform_2, window_bounds = array<i64: 1, 128>}, {transform_indices = @transform_3, window_bounds = array<i64: 1, 256, 128>}]} {
    %c0_i32 = arith.constant 0 : i32
    %0 = arith.cmpi eq, %arg2, %c0_i32 : i32
    %1 = arith.extui %0 : i1 to i32
    %c0_i32_0 = arith.constant 0 : i32
    %2 = arith.cmpi ne, %1, %c0_i32_0 : i32
    scf.if %2 {
      %cst_14 = arith.constant 0.000000e+00 : f32
      %19 = vector.broadcast %cst_14 : f32 to vector<256x128xf32>
      %c0_15 = arith.constant 0 : index
      %c0_16 = arith.constant 0 : index
      %20 = vector.load %arg7[%c0_15, %c0_16] : memref<256x128xf32, #tpu.memory_space<vmem>>, vector<256x128xf32>
      tpu.vector_store %arg7[%c0_15, %c0_16], %19 {strides = array<i32>} : memref<256x128xf32, #tpu.memory_space<vmem>>, vector<256x128xf32>,
    } else {
    }
    %c0 = arith.constant 0 : index
    %c0_1 = arith.constant 0 : index
    %c0_2 = arith.constant 0 : index
    %3 = vector.load %arg3[%c0, %c0_1, %c0_2] : memref<1x256x256xbf16, #tpu.memory_space<vmem>>, vector<1x256x256xbf16>
    %4 = vector.shape_cast %3 : vector<1x256x256xbf16> to vector<256x256xbf16>
    %cst = arith.constant 0.000000e+00 : bf16
    %5 = vector.broadcast %cst : bf16 to vector<256x256xbf16>
    %6 = arith.cmpf oge, %4, %5 : vector<256x256xbf16>
    %cst_3 = arith.constant 2.001950e-01 : bf16
    %7 = vector.broadcast %cst_3 : bf16 to vector<256x256xbf16>
    %8 = arith.mulf %7, %4 : vector<256x256xbf16>
    %9 = arith.select %6, %4, %8 : vector<256x256xi1>, vector<256x256xbf16>
    %c0_4 = arith.constant 0 : index
    %c0_5 = arith.constant 0 : index
    %10 = vector.load %arg7[%c0_4, %c0_5] : memref<256x128xf32, #tpu.memory_space<vmem>>, vector<256x128xf32>
    %c0_6 = arith.constant 0 : index
    %c0_7 = arith.constant 0 : index
    %c0_8 = arith.constant 0 : index
    %11 = vector.load %arg4[%c0_6, %c0_7, %c0_8] : memref<1x256x128xbf16, #tpu.memory_space<vmem>>, vector<1x256x128xbf16>
    %12 = vector.shape_cast %11 : vector<1x256x128xbf16> to vector<256x128xbf16>
    %cst_9 = arith.constant dense<0.000000e+00> : vector<256x128xf32>
    %13 = tpu.matmul %9, %12, %cst_9 {dimension_numbers = #tpu.dot_dimension_numbers<[1], [0], [0], [1], [0, 0, 1, 1], [], []>} : vector<256x256xbf16>, vector<256x128xbf16>, vector<256x128xf32> -> vector<256x128xf32>
    %14 = arith.addf %10, %13 : vector<256x128xf32>
    %c0_10 = arith.constant 0 : index
    %c0_11 = arith.constant 0 : index
    %15 = vector.load %arg7[%c0_10, %c0_11] : memref<256x128xf32, #tpu.memory_space<vmem>>, vector<256x128xf32>
    tpu.vector_store %arg7[%c0_10, %c0_11], %14 {strides = array<i32>} : memref<256x128xf32, #tpu.memory_space<vmem>>, vector<256x128xf32>,
    %c0_i32_12 = arith.constant 0 : i32
    %16 = arith.cmpi eq, %arg2, %c0_i32_12 : i32
    %17 = arith.extui %16 : i1 to i32
    %c0_i32_13 = arith.constant 0 : i32
    %18 = arith.cmpi ne, %17, %c0_i32_13 : i32
    scf.if %18 {
      %c0_14 = arith.constant 0 : index
      %c0_15 = arith.constant 0 : index
      %19 = vector.load %arg7[%c0_14, %c0_15] : memref<256x128xf32, #tpu.memory_space<vmem>>, vector<256x128xf32>
      %c0_16 = arith.constant 0 : index
      %c0_17 = arith.constant 0 : index
      %20 = vector.load %arg5[%c0_16, %c0_17] : memref<1x128xf32, #tpu.memory_space<vmem>>, vector<1x128xf32>
      %21 = vector.broadcast %20 : vector<1x128xf32> to vector<256x128xf32>
      %22 = arith.addf %19, %21 : vector<256x128xf32>
      %cst_18 = arith.constant 0.000000e+00 : f32
      %23 = vector.broadcast %cst_18 : f32 to vector<256x128xf32>
      %24 = arith.maximumf %22, %23 : vector<256x128xf32>
      %25 = arith.truncf %24 : vector<256x128xf32> to vector<256x128xbf16>
      %c0_19 = arith.constant 0 : index
      %c0_20 = arith.constant 0 : index
      %c0_21 = arith.constant 0 : index
      %26 = vector.load %arg6[%c0_19, %c0_20, %c0_21] : memref<1x256x128xbf16, #tpu.memory_space<vmem>>, vector<1x256x128xbf16>
      %27 = vector.shape_cast %26 : vector<1x256x128xbf16> to vector<256x128xbf16>
      %28 = vector.shape_cast %25 : vector<256x128xbf16> to vector<1x256x128xbf16>
      tpu.vector_store %arg6[%c0_19, %c0_20, %c0_21], %28 {strides = array<i32>} : memref<1x256x128xbf16, #tpu.memory_space<vmem>>, vector<1x256x128xbf16>,
    } else {
    }
    return
  }
  func.func @transform_0(%arg0: i32, %arg1: i32, %arg2: i32) -> (i32, i32, i32) {
    %c0_i32 = arith.constant 0 : i32
    return %arg0, %arg1, %arg2 : i32, i32, i32
  }
  func.func @transform_1(%arg0: i32, %arg1: i32, %arg2: i32) -> (i32, i32, i32) {
    %c0_i32 = arith.constant 0 : i32
    %c0_i32_0 = arith.constant 0 : i32
    return %arg0, %arg2, %c0_i32 : i32, i32, i32
  }
  func.func @transform_2(%arg0: i32, %arg1: i32, %arg2: i32) -> (i32, i32) {
    %c0_i32 = arith.constant 0 : i32
    %c0_i32_0 = arith.constant 0 : i32
    %c0_i32_1 = arith.constant 0 : i32
    return %c0_i32, %c0_i32_0 : i32, i32
  }
  func.func @transform_3(%arg0: i32, %arg1: i32, %arg2: i32) -> (i32, i32, i32) {
    %c0_i32 = arith.constant 0 : i32
    %c0_i32_0 = arith.constant 0 : i32
    return %arg0, %arg1, %c0_i32 : i32, i32, i32
  }
}

module attributes {stable_mosaic.version = 11 : i64} {
  func.func @_conv_mm_kernel(%arg0: i32, %arg1: i32, %arg2: i32, %arg3: memref<1x256x128xbf16, #tpu.memory_space<vmem>>, %arg4: memref<1x128x128xbf16, #tpu.memory_space<vmem>>, %arg5: memref<1x128xf32, #tpu.memory_space<vmem>>, %arg6: memref<1x256x128xf32, #tpu.memory_space<vmem>>, %arg7: memref<256x128xf32, #tpu.memory_space<vmem>>) attributes {dimension_semantics = [#tpu.dimension_semantics<parallel>, #tpu.dimension_semantics<parallel>, #tpu.dimension_semantics<arbitrary>], iteration_bounds = array<i64: 8, 4, 1>, scalar_prefetch = 0 : i64, scratch_operands = 1 : i64, tpu.core_type = #tpu.core_type<tc>, window_params = [{transform_indices = @transform_0, window_bounds = array<i64: 1, 256, 128>}, {transform_indices = @transform_1, window_bounds = array<i64: 1, 128, 128>}, {pipeline_mode = #tpu.pipeline_mode<synchronous>, transform_indices = @transform_2, window_bounds = array<i64: 1, 128>}, {transform_indices = @transform_3, window_bounds = array<i64: 1, 256, 128>}]} {
    %c0_i32 = arith.constant 0 : i32
    %0 = arith.cmpi eq, %arg2, %c0_i32 : i32
    %1 = arith.extui %0 : i1 to i32
    %c0_i32_0 = arith.constant 0 : i32
    %2 = arith.cmpi ne, %1, %c0_i32_0 : i32
    scf.if %2 {
      %cst_12 = arith.constant 0.000000e+00 : f32
      %14 = vector.broadcast %cst_12 : f32 to vector<256x128xf32>
      %c0_13 = arith.constant 0 : index
      %c0_14 = arith.constant 0 : index
      %15 = vector.load %arg7[%c0_13, %c0_14] : memref<256x128xf32, #tpu.memory_space<vmem>>, vector<256x128xf32>
      tpu.vector_store %arg7[%c0_13, %c0_14], %14 {strides = array<i32>} : memref<256x128xf32, #tpu.memory_space<vmem>>, vector<256x128xf32>,
    } else {
    }
    %c0 = arith.constant 0 : index
    %c0_1 = arith.constant 0 : index
    %c0_2 = arith.constant 0 : index
    %3 = vector.load %arg3[%c0, %c0_1, %c0_2] : memref<1x256x128xbf16, #tpu.memory_space<vmem>>, vector<1x256x128xbf16>
    %4 = vector.shape_cast %3 : vector<1x256x128xbf16> to vector<256x128xbf16>
    %c0_3 = arith.constant 0 : index
    %c0_4 = arith.constant 0 : index
    %5 = vector.load %arg7[%c0_3, %c0_4] : memref<256x128xf32, #tpu.memory_space<vmem>>, vector<256x128xf32>
    %c0_5 = arith.constant 0 : index
    %c0_6 = arith.constant 0 : index
    %c0_7 = arith.constant 0 : index
    %6 = vector.load %arg4[%c0_5, %c0_6, %c0_7] : memref<1x128x128xbf16, #tpu.memory_space<vmem>>, vector<1x128x128xbf16>
    %7 = vector.shape_cast %6 : vector<1x128x128xbf16> to vector<128x128xbf16>
    %cst = arith.constant dense<0.000000e+00> : vector<256x128xf32>
    %8 = tpu.matmul %4, %7, %cst {dimension_numbers = #tpu.dot_dimension_numbers<[1], [0], [0], [1], [0, 0, 1, 1], [], []>} : vector<256x128xbf16>, vector<128x128xbf16>, vector<256x128xf32> -> vector<256x128xf32>
    %9 = arith.addf %5, %8 : vector<256x128xf32>
    %c0_8 = arith.constant 0 : index
    %c0_9 = arith.constant 0 : index
    %10 = vector.load %arg7[%c0_8, %c0_9] : memref<256x128xf32, #tpu.memory_space<vmem>>, vector<256x128xf32>
    tpu.vector_store %arg7[%c0_8, %c0_9], %9 {strides = array<i32>} : memref<256x128xf32, #tpu.memory_space<vmem>>, vector<256x128xf32>,
    %c0_i32_10 = arith.constant 0 : i32
    %11 = arith.cmpi eq, %arg2, %c0_i32_10 : i32
    %12 = arith.extui %11 : i1 to i32
    %c0_i32_11 = arith.constant 0 : i32
    %13 = arith.cmpi ne, %12, %c0_i32_11 : i32
    scf.if %13 {
      %c0_12 = arith.constant 0 : index
      %c0_13 = arith.constant 0 : index
      %14 = vector.load %arg7[%c0_12, %c0_13] : memref<256x128xf32, #tpu.memory_space<vmem>>, vector<256x128xf32>
      %c0_14 = arith.constant 0 : index
      %c0_15 = arith.constant 0 : index
      %15 = vector.load %arg5[%c0_14, %c0_15] : memref<1x128xf32, #tpu.memory_space<vmem>>, vector<1x128xf32>
      %16 = vector.broadcast %15 : vector<1x128xf32> to vector<256x128xf32>
      %17 = arith.addf %14, %16 : vector<256x128xf32>
      %c0_16 = arith.constant 0 : index
      %c0_17 = arith.constant 0 : index
      %c0_18 = arith.constant 0 : index
      %18 = vector.load %arg6[%c0_16, %c0_17, %c0_18] : memref<1x256x128xf32, #tpu.memory_space<vmem>>, vector<1x256x128xf32>
      %19 = vector.shape_cast %18 : vector<1x256x128xf32> to vector<256x128xf32>
      %20 = vector.shape_cast %17 : vector<256x128xf32> to vector<1x256x128xf32>
      tpu.vector_store %arg6[%c0_16, %c0_17, %c0_18], %20 {strides = array<i32>} : memref<1x256x128xf32, #tpu.memory_space<vmem>>, vector<1x256x128xf32>,
    } else {
    }
    return
  }
  func.func @transform_0(%arg0: i32, %arg1: i32, %arg2: i32) -> (i32, i32, i32) {
    %c0_i32 = arith.constant 0 : i32
    return %arg0, %arg1, %arg2 : i32, i32, i32
  }
  func.func @transform_1(%arg0: i32, %arg1: i32, %arg2: i32) -> (i32, i32, i32) {
    %c0_i32 = arith.constant 0 : i32
    %c0_i32_0 = arith.constant 0 : i32
    return %arg0, %arg2, %c0_i32 : i32, i32, i32
  }
  func.func @transform_2(%arg0: i32, %arg1: i32, %arg2: i32) -> (i32, i32) {
    %c0_i32 = arith.constant 0 : i32
    %c0_i32_0 = arith.constant 0 : i32
    %c0_i32_1 = arith.constant 0 : i32
    return %c0_i32, %c0_i32_0 : i32, i32
  }
  func.func @transform_3(%arg0: i32, %arg1: i32, %arg2: i32) -> (i32, i32, i32) {
    %c0_i32 = arith.constant 0 : i32
    %c0_i32_0 = arith.constant 0 : i32
    return %arg0, %arg1, %c0_i32 : i32, i32, i32
  }
}

</mosaic_0001>

<bundles_post_ra>
// kernel: unet_block_innermost_forward.2
= control target key start
LH: loop header
LB: loop body
LE: loop exit
PB: predicated region body
PF: predicated region fallthrough
CT: control target
= control target key end

     0   :  { %s1748_s12 = smov 0   ;;  %s1750_s13 = smov 0   ;;  %s2330_s0 = inlined_call_operand.vmem [shape: bf16[1,1024,256], index: 0, kind: input, shape index: {}]   ;;  %s2331_s1 = inlined_call_operand.vmem [shape: bf16[1,256,128], index: 1, kind: input, shape index: {}]   ;;  %s2332_s2 = inlined_call_operand.vmem [shape: f32[1,128], index: 2, kind: input, shape index: {}]   ;;  %s2333_s3 = inlined_call_operand.vmem [shape: bf16[1,1024,128], index: 3, kind: output, shape index: {}]  }
   0x1   :  { %s1752_s14 = smov 0  }
   0x2 LB: > { %s28_s15 = sadd.s32 1, %s1722_s13  ;;  %p1479_p0 = scmp.ge.s32.totalorder %s1726_s14, 1  ;;  %s1726_s14 = sphi %s1752_s14, %s13_s14   ;;  %s1722_s13 = sphi %s1750_s13, %s2461_s13   ;;  %s1718_s12 = sphi %s1748_s12, %s2460_s12  }
   0x3   : > { %p30_p1 = scmp.ge.s32.totalorder %s28_s15, 4  ;;  %p190_p2 = scmp.lt.s32.totalorder %s1726_s14, 5 }
   0x5   : > { %s2463_s15 = smov (%p30_p1, %s28_s15), 0  ;;  %p191_p3 = pnand %p1479_p0, %p190_p2 }
   0x6   : > { %s1480_s20 = sshll.u32 (!%p191_p3), %s1718_s12, 5 }
   0x7   : > { %194 = sbr.rel (%p191_p3) target bundleno = 306 (0x132), region = 32  ;;  %p240_p4 = scmp.lt.s32.totalorder (!%p191_p3), %s1480_s20, 127 }
   0xc   : > { %v1559_v0 = vld [vmem:[%s2331_s1 + $0x38] sm:$0xff]  ;;  %v1558_v2 = vld [vmem:[%s2331_s1 + $0x30] sm:$0xff]  ;;  %s2465_s20 = smov (!%p240_p4, %s1480_s20), 127  ;;  %v1557_v4 = vld [vmem:[%s2331_s1 + $0x28] sm:$0xff] }
   0xd   : > { %v1567_v1 = vld [vmem:[%s2331_s1 + $0x78] sm:$0xff]  ;;  %948 = vmatpush.bf16.msra.mxu0 %v1559_v0  ;;  %1663 = vmatpush.bf16.msra.mxu2 %v1559_v0  ;;  %v1566_v3 = vld [vmem:[%s2331_s1 + $0x70] sm:$0xff]  ;;  %s1551_s25 = sshll.u32 %s2465_s20, 3  ;;  %v1565_v5 = vld [vmem:[%s2331_s1 + $0x68] sm:$0xff] }
   0xe   : > { %1037 = vmatpush.bf16.msra.mxu1 %v1567_v1  ;;  %1671 = vmatpush.bf16.msra.mxu3 %v1567_v1  ;;  %s1790_s5 = scalar_lea.vmem %s2330_s0, %s1551_s25  ;;  %v1556_v16 = vld [vmem:[%s2331_s1 + $0x20] sm:$0xff]  ;;  %v1555_v30 = vld [vmem:[%s2331_s1 + $0x18] sm:$0xff]  ;;  %v1554_v42 = vld [vmem:[%s2331_s1 + $0x10] sm:$0xff] }
   0xf   : > { %v308_v6 = vld [vmem:[%s1790_s5] sm:$0xff]  ;;  %v309_v7 = vld [vmem:[%s1790_s5 + $0x8] sm:$0xff]  ;;  %v1563_v35 = vld [vmem:[%s2331_s1 + $0x58] sm:$0xff] }
  0x10   : > { %v324_v8 = vld [vmem:[%s1790_s5 + $0x80] sm:$0xff]  ;;  %v340_v9 = vunpack.c.l.bf16 %v308_v6  ;;  %v341_v10 = vunpack.c.h.bf16 %v308_v6  ;;  %v342_v11 = vunpack.c.l.bf16 %v309_v7  ;;  %v343_v12 = vunpack.c.h.bf16 %v309_v7  ;;  %v325_v13 = vld [vmem:[%s1790_s5 + $0x88] sm:$0xff]  ;;  %v1562_v43 = vld [vmem:[%s2331_s1 + $0x50] sm:$0xff] }
  0x11   : > { %949 = vmatpush.bf16.msra.mxu0 %v1558_v2  ;;  %1664 = vmatpush.bf16.msra.mxu2 %v1558_v2  ;;  %v372_v14 = vunpack.c.l.bf16 %v324_v8  ;;  %v373_v15 = vunpack.c.h.bf16 %v324_v8  ;;  %v374_v17 = vunpack.c.l.bf16 %v325_v13  ;;  %v375_v18 = vunpack.c.h.bf16 %v325_v13  ;;  %v1564_v19 = vld [vmem:[%s2331_s1 + $0x60] sm:$0xff]  ;;  %v1863_v46 = vld [vmem:[%s1790_s5 + $0x10] sm:$0xff]  ;;  %v1866_v47 = vld [vmem:[%s1790_s5 + $0x18] sm:$0xff] }
  0x12   : > { %1038 = vmatpush.bf16.msra.mxu1 %v1566_v3  ;;  %1672 = vmatpush.bf16.msra.mxu3 %v1566_v3  ;;  %v468_v20 = vmul.f32 0.20019531, %v340_v9  ;;  %v469_v21 = vmul.f32 0.20019531, %v341_v10  ;;  %v470_v22 = vmul.f32 0.20019531, %v342_v11  ;;  %v471_v23 = vmul.f32 0.20019531, %v343_v12  ;;  %v1553_v50 = vld [vmem:[%s2331_s1 + $0x8] sm:$0xff]  ;;  %v1872_v53 = vld [vmem:[%s1790_s5 + $0x90] sm:$0xff] }
  0x13   : > { %vm1802_vm0 = vcmp.ge.f32.partialorder %v340_v9, 0.0  ;;  %vm1806_vm1 = vcmp.ge.f32.partialorder %v341_v10, 0.0  ;;  %vm1810_vm2 = vcmp.ge.f32.partialorder %v342_v11, 0.0  ;;  %vm1814_vm3 = vcmp.ge.f32.partialorder %v343_v12, 0.0  ;;  %v1875_v54 = vld [vmem:[%s1790_s5 + $0x98] sm:$0xff]  ;;  %v1561_v55 = vld [vmem:[%s2331_s1 + $0x48] sm:$0xff] }
  0x14   : > { %v500_v28 = vmul.f32 0.20019531, %v372_v14  ;;  %v501_v29 = vmul.f32 0.20019531, %v373_v15  ;;  %vm1821_vm4 = vcmp.ge.f32.partialorder %v372_v14, 0.0  ;;  %vm1825_vm5 = vcmp.ge.f32.partialorder %v373_v15, 0.0  ;;  %vm564_vm6 = vmpackc.low %vm1806_vm1, %vm1802_vm0  ;;  %v1560_v9 = vld [vmem:[%s2331_s1 + $0x40] sm:$0xff]  ;;  %v314_v15 = vld [vmem:[%s1790_s5 + $0x30] sm:$0xff] }
  0x15   : > { %950 = vmatpush.bf16.msra.mxu0 %v1557_v4  ;;  %1665 = vmatpush.bf16.msra.mxu2 %v1557_v4  ;;  %v502_v33 = vmul.f32 0.20019531, %v374_v17  ;;  %v503_v34 = vmul.f32 0.20019531, %v375_v18  ;;  %v532_v36 = vpack.c.bf16 %v469_v21, %v468_v20  ;;  %v533_v37 = vpack.c.bf16 %v471_v23, %v470_v22  ;;  %vm565_vm9 = vmpackc.low %vm1814_vm3, %vm1810_vm2  ;;  %v1552_v4 = vld [vmem:[%s2331_s1] sm:$0xff] }
  0x16   : > { %1039 = vmatpush.bf16.msra.mxu1 %v1565_v5  ;;  %1673 = vmatpush.bf16.msra.mxu3 %v1565_v5  ;;  %vm1836_vm7 = vcmp.ge.f32.partialorder %v374_v17, 0.0  ;;  %vm1840_vm8 = vcmp.ge.f32.partialorder %v375_v18, 0.0  ;;  %v548_v40 = vpack.c.bf16 %v501_v29, %v500_v28  ;;  %vm580_vm10 = vmpackc.low %vm1825_vm5, %vm1821_vm4  ;;  %v344_v56 = vunpack.c.l.bf16 %v1863_v46  ;;  %v328_v39 = vld [vmem:[%s1790_s5 + $0xa0] sm:$0xff] }
  0x17   : > { %v549_v41 = vpack.c.bf16 %v503_v34, %v502_v33  ;;  %vm581_vm11 = vmpackc.low %vm1840_vm8, %vm1836_vm7  ;;  %v596_v44 = vsel %vm564_vm6, %v308_v6, %v532_v36  ;;  %v597_v45 = vsel %vm565_vm9, %v309_v7, %v533_v37  ;;  %v345_v57 = vunpack.c.h.bf16 %v1863_v46  ;;  %v312_v33 = vld [vmem:[%s1790_s5 + $0x20] sm:$0xff]  ;;  %v313_v36 = vld [vmem:[%s1790_s5 + $0x28] sm:$0xff] }
  0x18   : > { %v612_v48 = vsel %vm580_vm10, %v324_v8, %v548_v40  ;;  %v724_v51 = vunpack.c.l.b16 %v596_v44  ;;  %v726_v52 = vunpack.c.l.b16 %v597_v45  ;;  %v346_v58 = vunpack.c.l.bf16 %v1866_v47  ;;  %v329_v40 = vld [vmem:[%s1790_s5 + $0xa8] sm:$0xff] }
  0x19   : > { %951 = vmatpush.bf16.msra.mxu0 %v1556_v16  ;;  %1666 = vmatpush.bf16.msra.mxu2 %v1556_v16  ;;  %v613_v49 = vsel %vm581_vm11, %v325_v13, %v549_v41  ;;  %v347_v59 = vunpack.c.h.bf16 %v1866_v47  ;;  %v756_v60 = vunpack.c.l.b16 %v612_v48  ;;  %v725_v62 = vunpack.c.h.b16 %v596_v44  ;;  %v315_v16 = vld [vmem:[%s1790_s5 + $0x38] sm:$0xff] }
  0x1a   : > { %1040 = vmatpush.bf16.msra.mxu1 %v1564_v19  ;;  %1674 = vmatpush.bf16.msra.mxu3 %v1564_v19  ;;  %v758_v61 = vunpack.c.l.b16 %v613_v49  ;;  %v727_v63 = vunpack.c.h.b16 %v597_v45  ;;  %v376_v0 = vunpack.c.l.bf16 %v1872_v53  ;;  %v377_v1 = vunpack.c.h.bf16 %v1872_v53 }
  0x1b   : > { %v378_v2 = vunpack.c.l.bf16 %v1875_v54  ;;  %v379_v3 = vunpack.c.h.bf16 %v1875_v54  ;;  %v788_v5 = vpack.c.b16 %v726_v52, %v724_v51  ;;  %v757_v6 = vunpack.c.h.b16 %v612_v48 }
  0x1c   : > { %v759_v7 = vunpack.c.h.b16 %v613_v49  ;;  %vm1891_vm12 = vcmp.ge.f32.partialorder %v344_v56, 0.0  ;;  %v472_v10 = vmul.f32 0.20019531, %v344_v56  ;;  %v473_v11 = vmul.f32 0.20019531, %v345_v57 }
  0x1d   : > { %952 = vmatpush.bf16.msra.mxu0 %v1555_v30  ;;  %1667 = vmatpush.bf16.msra.mxu2 %v1555_v30  ;;  %v474_v12 = vmul.f32 0.20019531, %v346_v58  ;;  %v475_v13 = vmul.f32 0.20019531, %v347_v59  ;;  %v804_v14 = vpack.c.b16 %v758_v61, %v756_v60  ;;  %vm1898_vm13 = vcmp.ge.f32.partialorder %v345_v57, 0.0 }
  0x1e   : > { %1041 = vmatpush.bf16.msra.mxu1 %v1563_v35  ;;  %1675 = vmatpush.bf16.msra.mxu3 %v1563_v35  ;;  %vm1902_vm14 = vcmp.ge.f32.partialorder %v346_v58, 0.0  ;;  %vm1906_vm15 = vcmp.ge.f32.partialorder %v347_v59, 0.0  ;;  %v504_v18 = vmul.f32 0.20019531, %v376_v0  ;;  %v505_v19 = vmul.f32 0.20019531, %v377_v1  ;;  %vm566_vm2 = vmpackc.low %vm1898_vm13, %vm1891_vm12 }
  0x1f   : > { %v506_v20 = vmul.f32 0.20019531, %v378_v2  ;;  %v507_v21 = vmul.f32 0.20019531, %v379_v3  ;;  %v789_v22 = vpack.c.b16 %v727_v63, %v725_v62  ;;  %v805_v23 = vpack.c.b16 %v759_v7, %v757_v6  ;;  %vm567_vm5 = vmpackc.low %vm1906_vm15, %vm1902_vm14 }
  0x20   : > { %vm1910_vm0 = vcmp.ge.f32.partialorder %v376_v0, 0.0  ;;  %vm1914_vm1 = vcmp.ge.f32.partialorder %v377_v1, 0.0  ;;  %v534_v26 = vpack.c.bf16 %v473_v11, %v472_v10  ;;  %v535_v27 = vpack.c.bf16 %v475_v13, %v474_v12 }
  0x21   : > { %953 = vmatpush.bf16.msra.mxu0 %v1554_v42  ;;  %1668 = vmatpush.bf16.msra.mxu2 %v1554_v42  ;;  %vm1922_vm3 = vcmp.ge.f32.partialorder %v378_v2, 0.0  ;;  %vm443_vm4 = vcmp.ge.f32.partialorder %v379_v3, 0.0  ;;  %v550_v29 = vpack.c.bf16 %v505_v19, %v504_v18  ;;  %v551_v30 = vpack.c.bf16 %v507_v21, %v506_v20  ;;  %vm582_vm6 = vmpackc.low %vm1914_vm1, %vm1910_vm0 }
  0x22   : > { %1042 = vmatpush.bf16.msra.mxu1 %v1562_v43  ;;  %1676 = vmatpush.bf16.msra.mxu3 %v1562_v43  ;;  %vm583_vm7 = vmpackc.low %vm443_vm4, %vm1922_vm3  ;;  %v598_v31 = vsel %vm566_vm2, %v1863_v46, %v534_v26  ;;  %v599_v32 = vsel %vm567_vm5, %v1866_v47, %v535_v27  ;;  %v348_v43 = vunpack.c.l.bf16 %v312_v33  ;;  %v349_v44 = vunpack.c.h.bf16 %v312_v33 }
  0x23   : > { %v614_v34 = vsel %vm582_vm6, %v1872_v53, %v550_v29  ;;  %v615_v35 = vsel %vm583_vm7, %v1875_v54, %v551_v30  ;;  %v728_v37 = vunpack.c.l.b16 %v598_v31  ;;  %v730_v38 = vunpack.c.l.b16 %v599_v32  ;;  %v330_v29 = vld [vmem:[%s1790_s5 + $0xb0] sm:$0xff]  ;;  %v331_v30 = vld [vmem:[%s1790_s5 + $0xb8] sm:$0xff] }
  0x24   : > { %v729_v41 = vunpack.c.h.b16 %v598_v31  ;;  %v731_v42 = vunpack.c.h.b16 %v599_v32  ;;  %v760_v45 = vunpack.c.l.b16 %v614_v34  ;;  %v762_v48 = vunpack.c.l.b16 %v615_v35 }
  0x25   : > { %954 = vmatpush.bf16.msra.mxu0 %v1553_v50  ;;  %1669 = vmatpush.bf16.msra.mxu2 %v1553_v50  ;;  %v350_v49 = vunpack.c.l.bf16 %v313_v36  ;;  %v351_v46 = vunpack.c.h.bf16 %v313_v36  ;;  %v380_v50 = vunpack.c.l.bf16 %v328_v39  ;;  %v381_v47 = vunpack.c.h.bf16 %v328_v39 }
  0x26   : > { %1043 = vmatpush.bf16.msra.mxu1 %v1561_v55  ;;  %1677 = vmatpush.bf16.msra.mxu3 %v1561_v55  ;;  %v382_v51 = vunpack.c.l.bf16 %v329_v40  ;;  %v383_v52 = vunpack.c.h.bf16 %v329_v40  ;;  %v790_v53 = vpack.c.b16 %v730_v38, %v728_v37  ;;  %v761_v55 = vunpack.c.h.b16 %v614_v34 }
  0x27   : > { %v763_v54 = vunpack.c.h.b16 %v615_v35  ;;  %vm1944_vm8 = vcmp.ge.f32.partialorder %v348_v43, 0.0  ;;  %vm1948_vm9 = vcmp.ge.f32.partialorder %v349_v44, 0.0  ;;  %vm1952_vm10 = vcmp.ge.f32.partialorder %v350_v49, 0.0 }
  0x28   : > { %vm1956_vm11 = vcmp.ge.f32.partialorder %v351_v46, 0.0  ;;  %v476_v60 = vmul.f32 0.20019531, %v348_v43  ;;  %v806_v61 = vpack.c.b16 %v762_v48, %v760_v45  ;;  %v477_v62 = vmul.f32 0.20019531, %v349_v44  ;;  %vm568_vm14 = vmpackc.low %vm1948_vm9, %vm1944_vm8 }
  0x29   : > { %955 = vmatpush.bf16.msra.mxu0 %v1552_v4  ;;  %1670 = vmatpush.bf16.msra.mxu2 %v1552_v4  ;;  %v478_v63 = vmul.f32 0.20019531, %v350_v49  ;;  %v479_v0 = vmul.f32 0.20019531, %v351_v46  ;;  %v508_v1 = vmul.f32 0.20019531, %v380_v50  ;;  %v509_v2 = vmul.f32 0.20019531, %v381_v47  ;;  %vm569_vm1 = vmpackc.low %vm1956_vm11, %vm1952_vm10  ;;  %v318_v49 = vld [vmem:[%s1790_s5 + $0x50] sm:$0xff]  ;;  %v319_v46 = vld [vmem:[%s1790_s5 + $0x58] sm:$0xff] }
  0x2a   : > { %1044 = vmatpush.bf16.msra.mxu1 %v1560_v9  ;;  %1678 = vmatpush.bf16.msra.mxu3 %v1560_v9  ;;  %v510_v3 = vmul.f32 0.20019531, %v382_v51  ;;  %v511_v4 = vmul.f32 0.20019531, %v383_v52  ;;  %v807_v6 = vpack.c.b16 %v763_v54, %v761_v55  ;;  %vm1960_vm12 = vcmp.ge.f32.partialorder %v380_v50, 0.0 }
  0x2b   : > { %vm1964_vm13 = vcmp.ge.f32.partialorder %v381_v47, 0.0  ;;  %vm1972_vm15 = vcmp.ge.f32.partialorder %v382_v51, 0.0  ;;  %vm1976_vm0 = vcmp.ge.f32.partialorder %v383_v52, 0.0  ;;  %v536_v11 = vpack.c.bf16 %v477_v62, %v476_v60 }
  0x2c   : > { %956 = vmatmul.bf16.vlgmr.msra.gmra.mxu0 %v788_v5  ;;  %996 = vmatmul.bf16.vlgmr.msra.gmra.mxu2 %v804_v14  ;;  %v791_v5 = vpack.c.b16 %v731_v42, %v729_v41  ;;  %v537_v12 = vpack.c.bf16 %v479_v0, %v478_v63  ;;  %v552_v13 = vpack.c.bf16 %v509_v2, %v508_v1  ;;  %vm584_vm2 = vmpackc.low %vm1964_vm13, %vm1960_vm12  ;;  %v352_v19 = vunpack.c.l.bf16 %v314_v15  ;;  %v316_v1 = vld [vmem:[%s1790_s5 + $0x40] sm:$0xff]  ;;  %v317_v2 = vld [vmem:[%s1790_s5 + $0x48] sm:$0xff] }
  0x2d   : > { %1045 = vmatmul.bf16.vlgmr.msra.gmra.mxu1 %v789_v22  ;;  %1085 = vmatmul.bf16.vlgmr.msra.gmra.mxu3 %v805_v23  ;;  %v553_v14 = vpack.c.bf16 %v511_v4, %v510_v3  ;;  %vm585_vm3 = vmpackc.low %vm1976_vm0, %vm1972_vm15  ;;  %v600_v17 = vsel %vm568_vm14, %v312_v33, %v536_v11  ;;  %v353_v20 = vunpack.c.h.bf16 %v314_v15  ;;  %v354_v23 = vunpack.c.l.bf16 %v315_v16 }
  0x2e   : > { %v601_v18 = vsel %vm569_vm1, %v313_v36, %v537_v12  ;;  %v616_v21 = vsel %vm584_vm2, %v328_v39, %v552_v13  ;;  %v355_v24 = vunpack.c.h.bf16 %v315_v16  ;;  %v732_v25 = vunpack.c.l.b16 %v600_v17 }
  0x2f   : > { %v617_v22 = vsel %vm585_vm3, %v329_v40, %v553_v14  ;;  %v734_v26 = vunpack.c.l.b16 %v601_v18  ;;  %v733_v27 = vunpack.c.h.b16 %v600_v17  ;;  %v735_v28 = vunpack.c.h.b16 %v601_v18 }
  0x30   : > { %v764_v31 = vunpack.c.l.b16 %v616_v21  ;;  %v766_v32 = vunpack.c.l.b16 %v617_v22  ;;  %v765_v34 = vunpack.c.h.b16 %v616_v21  ;;  %v767_v35 = vunpack.c.h.b16 %v617_v22 }
  0x31   : > { %v480_v37 = vmul.f32 0.20019531, %v352_v19  ;;  %v481_v38 = vmul.f32 0.20019531, %v353_v20  ;;  %v482_v33 = vmul.f32 0.20019531, %v354_v23  ;;  %v483_v36 = vmul.f32 0.20019531, %v355_v24 }
  0x32   : > { %v384_v41 = vunpack.c.l.bf16 %v330_v29  ;;  %v385_v42 = vunpack.c.h.bf16 %v330_v29  ;;  %v386_v39 = vunpack.c.l.bf16 %v331_v30  ;;  %v387_v40 = vunpack.c.h.bf16 %v331_v30 }
  0x33   : > { %vm2001_vm4 = vcmp.ge.f32.partialorder %v352_v19, 0.0  ;;  %vm2005_vm5 = vcmp.ge.f32.partialorder %v353_v20, 0.0  ;;  %v792_v45 = vpack.c.b16 %v734_v26, %v732_v25  ;;  %v793_v48 = vpack.c.b16 %v735_v28, %v733_v27 }
  0x34   : > { %vm2009_vm6 = vcmp.ge.f32.partialorder %v354_v23, 0.0  ;;  %vm2013_vm7 = vcmp.ge.f32.partialorder %v355_v24, 0.0  ;;  %v808_v50 = vpack.c.b16 %v766_v32, %v764_v31  ;;  %v809_v47 = vpack.c.b16 %v767_v35, %v765_v34  ;;  %vm570_vm8 = vmpackc.low %vm2005_vm5, %vm2001_vm4 }
  0x35   : > { %v538_v51 = vpack.c.bf16 %v481_v38, %v480_v37  ;;  %v539_v52 = vpack.c.bf16 %v483_v36, %v482_v33  ;;  %v513_v55 = vmul.f32 0.20019531, %v385_v42  ;;  %v514_v54 = vmul.f32 0.20019531, %v386_v39  ;;  %vm571_vm9 = vmpackc.low %vm2013_vm7, %vm2009_vm6  ;;  %v336_v33 = vld [vmem:[%s1790_s5 + $0xe0] sm:$0xff]  ;;  %v337_v36 = vld [vmem:[%s1790_s5 + $0xe8] sm:$0xff] }
  0x36   : > { %v515_v56 = vmul.f32 0.20019531, %v387_v40  ;;  %vm2025_vm10 = vcmp.ge.f32.partialorder %v384_v41, 0.0  ;;  %vm2029_vm11 = vcmp.ge.f32.partialorder %v385_v42, 0.0  ;;  %vm2033_vm12 = vcmp.ge.f32.partialorder %v386_v39, 0.0 }
  0x37   : > { %vm2037_vm13 = vcmp.ge.f32.partialorder %v387_v40, 0.0  ;;  %v603_v62 = vsel %vm571_vm9, %v315_v16, %v539_v52  ;;  %vm586_vm14 = vmpackc.low %vm2029_vm11, %vm2025_vm10  ;;  %v356_v10 = vunpack.c.l.bf16 %v316_v1  ;;  %v357_v12 = vunpack.c.h.bf16 %v316_v1 }
  0x38   : > { %v555_v0 = vpack.c.bf16 %v515_v56, %v514_v54  ;;  %vm587_vm15 = vmpackc.low %vm2037_vm13, %vm2033_vm12  ;;  %v738_v4 = vunpack.c.l.b16 %v603_v62  ;;  %v739_v11 = vunpack.c.h.b16 %v603_v62  ;;  %v358_v13 = vunpack.c.l.bf16 %v317_v2  ;;  %v335_v62 = vld [vmem:[%s1790_s5 + $0xd8] sm:$0xff] }
  0x39   : > { %v359_v14 = vunpack.c.h.bf16 %v317_v2  ;;  %vm2053_vm0 = vcmp.ge.f32.partialorder %v356_v10, 0.0  ;;  %vm2057_vm1 = vcmp.ge.f32.partialorder %v357_v12, 0.0  ;;  %v484_v26 = vmul.f32 0.20019531, %v356_v10 }
  0x3a   : > { %v619_v8 = vsel %vm587_vm15, %v331_v30, %v555_v0  ;;  %vm2061_vm2 = vcmp.ge.f32.partialorder %v358_v13, 0.0  ;;  %v485_v28 = vmul.f32 0.20019531, %v357_v12  ;;  %vm572_vm6 = vmpackc.low %vm2057_vm1, %vm2053_vm0  ;;  %v362_v54 = vunpack.c.l.bf16 %v319_v46 }
  0x3b   : > { %v770_v20 = vunpack.c.l.b16 %v619_v8  ;;  %v771_v22 = vunpack.c.h.b16 %v619_v8  ;;  %vm2065_vm3 = vcmp.ge.f32.partialorder %v359_v14, 0.0  ;;  %v487_v30 = vmul.f32 0.20019531, %v359_v14 }
  0x3c   : > { %961 = vmatmul.bf16.gmra.mxu0 %v790_v53  ;;  %1001 = vmatmul.bf16.gmra.mxu2 %v806_v61  ;;  %v512_v53 = vmul.f32 0.20019531, %v384_v41  ;;  %v602_v61 = vsel %vm570_vm8, %v314_v15, %v538_v51  ;;  %vm573_vm9 = vmpackc.low %vm2065_vm3, %vm2061_vm2  ;;  %v540_v43 = vpack.c.bf16 %v485_v28, %v484_v26  ;;  %v363_v56 = vunpack.c.h.bf16 %v319_v46 }
  0x3d   : > { %1050 = vmatmul.bf16.gmra.mxu1 %v791_v5  ;;  %1090 = vmatmul.bf16.gmra.mxu3 %v807_v6  ;;  %v736_v3 = vunpack.c.l.b16 %v602_v61  ;;  %v332_v5 = vld [vmem:[%s1790_s5 + $0xc0] sm:$0xff]  ;;  %v333_v6 = vld [vmem:[%s1790_s5 + $0xc8] sm:$0xff]  ;;  %v737_v9 = vunpack.c.h.b16 %v602_v61  ;;  %v334_v61 = vld [vmem:[%s1790_s5 + $0xd0] sm:$0xff]  ;;  %v395_v10 = vunpack.c.h.bf16 %v335_v62 }
  0x3e   : > { %v554_v63 = vpack.c.bf16 %v513_v55, %v512_v53  ;;  %v388_v15 = vunpack.c.l.bf16 %v332_v5  ;;  %v389_v16 = vunpack.c.h.bf16 %v332_v5  ;;  %v390_v17 = vunpack.c.l.bf16 %v333_v6 }
  0x3f   : > { %v391_v18 = vunpack.c.h.bf16 %v333_v6  ;;  %v794_v37 = vpack.c.b16 %v738_v4, %v736_v3  ;;  %v795_v41 = vpack.c.b16 %v739_v11, %v737_v9  ;;  %v360_v53 = vunpack.c.l.bf16 %v318_v49 }
  0x40   : > { %v618_v7 = vsel %vm586_vm14, %v330_v29, %v554_v63  ;;  %v486_v29 = vmul.f32 0.20019531, %v358_v13  ;;  %v516_v31 = vmul.f32 0.20019531, %v388_v15  ;;  %v517_v32 = vmul.f32 0.20019531, %v389_v16 }
  0x41   : > { %v768_v19 = vunpack.c.l.b16 %v618_v7  ;;  %v769_v21 = vunpack.c.h.b16 %v618_v7  ;;  %v518_v34 = vmul.f32 0.20019531, %v390_v17  ;;  %v519_v35 = vmul.f32 0.20019531, %v391_v18 }
  0x42   : > { %vm2069_vm4 = vcmp.ge.f32.partialorder %v388_v15, 0.0  ;;  %vm2073_vm5 = vcmp.ge.f32.partialorder %v389_v16, 0.0  ;;  %vm2081_vm7 = vcmp.ge.f32.partialorder %v390_v17, 0.0  ;;  %vm2085_vm8 = vcmp.ge.f32.partialorder %v391_v18, 0.0 }
  0x43   : > { %v810_v38 = vpack.c.b16 %v770_v20, %v768_v19  ;;  %v811_v42 = vpack.c.b16 %v771_v22, %v769_v21  ;;  %v541_v44 = vpack.c.bf16 %v487_v30, %v486_v29  ;;  %vm588_vm10 = vmpackc.low %vm2073_vm5, %vm2069_vm4  ;;  %v361_v55 = vunpack.c.h.bf16 %v318_v49 }
  0x44   : > { %vm589_vm11 = vmpackc.low %vm2085_vm8, %vm2081_vm7  ;;  %v488_v7 = vmul.f32 0.20019531, %v360_v53  ;;  %v394_v9 = vunpack.c.l.bf16 %v335_v62  ;;  %vm2110_vm12 = vcmp.ge.f32.partialorder %v360_v53, 0.0  ;;  %vm2118_vm14 = vcmp.ge.f32.partialorder %v362_v54, 0.0 }
  0x45   : > { %v489_v8 = vmul.f32 0.20019531, %v361_v55  ;;  %vm2114_vm13 = vcmp.ge.f32.partialorder %v361_v55, 0.0  ;;  %vm2122_vm15 = vcmp.ge.f32.partialorder %v363_v56, 0.0  ;;  %v523_v24 = vmul.f32 0.20019531, %v395_v10 }
  0x46   : > { %vm574_vm0 = vmpackc.low %vm2114_vm13, %vm2110_vm12  ;;  %v522_v23 = vmul.f32 0.20019531, %v394_v9  ;;  %vm2142_vm4 = vcmp.ge.f32.partialorder %v394_v9, 0.0  ;;  %vm2146_vm5 = vcmp.ge.f32.partialorder %v395_v10, 0.0 }
  0x47   : > { %v542_v19 = vpack.c.bf16 %v489_v8, %v488_v7  ;;  %vm575_vm1 = vmpackc.low %vm2122_vm15, %vm2118_vm14 }
  0x48   : > { %vm591_vm7 = vmpackc.low %vm2146_vm5, %vm2142_vm4 }
  0x49   : > { %v606_v29 = vsel %vm574_vm0, %v318_v49, %v542_v19  ;;  %v396_v49 = vunpack.c.l.bf16 %v336_v33 }
  0x4a   : > { %v745_v39 = vunpack.c.h.b16 %v606_v29 }
  0x4b   : > { %vm2178_vm12 = vcmp.ge.f32.partialorder %v396_v49, 0.0 }
  0x4c   : > { %966 = vmatmul.bf16.gmra.mxu0 %v792_v45  ;;  %1006 = vmatmul.bf16.gmra.mxu2 %v808_v50  ;;  %v556_v45 = vpack.c.bf16 %v517_v32, %v516_v31  ;;  %v604_v50 = vsel %vm572_vm6, %v316_v1, %v540_v43  ;;  %v490_v1 = vmul.f32 0.20019531, %v362_v54  ;;  %v559_v32 = vpack.c.bf16 %v523_v24, %v522_v23  ;;  %v322_v23 = vld [vmem:[%s1790_s5 + $0x70] sm:$0xff]  ;;  %v323_v24 = vld [vmem:[%s1790_s5 + $0x78] sm:$0xff] }
  0x4d   : > { %1055 = vmatmul.bf16.gmra.mxu1 %v793_v48  ;;  %1095 = vmatmul.bf16.gmra.mxu3 %v809_v47  ;;  %v557_v48 = vpack.c.bf16 %v519_v35, %v518_v34  ;;  %v605_v47 = vsel %vm573_vm9, %v317_v2, %v541_v44  ;;  %v740_v57 = vunpack.c.l.b16 %v604_v50  ;;  %v741_v59 = vunpack.c.h.b16 %v604_v50  ;;  %v320_v34 = vld [vmem:[%s1790_s5 + $0x60] sm:$0xff]  ;;  %v321_v35 = vld [vmem:[%s1790_s5 + $0x68] sm:$0xff] }
  0x4e   : > { %v620_v51 = vsel %vm588_vm10, %v332_v5, %v556_v45  ;;  %v742_v58 = vunpack.c.l.b16 %v605_v47  ;;  %v743_v60 = vunpack.c.h.b16 %v605_v47  ;;  %v491_v2 = vmul.f32 0.20019531, %v363_v56 }
  0x4f   : > { %v621_v52 = vsel %vm589_vm11, %v333_v6, %v557_v48  ;;  %v772_v63 = vunpack.c.l.b16 %v620_v51  ;;  %v773_v3 = vunpack.c.h.b16 %v620_v51  ;;  %v392_v5 = vunpack.c.l.bf16 %v334_v61 }
  0x50   : > { %v774_v0 = vunpack.c.l.b16 %v621_v52  ;;  %v775_v4 = vunpack.c.h.b16 %v621_v52  ;;  %v393_v6 = vunpack.c.h.bf16 %v334_v61  ;;  %v796_v13 = vpack.c.b16 %v742_v58, %v740_v57 }
  0x51   : > { %v797_v14 = vpack.c.b16 %v743_v60, %v741_v59  ;;  %v543_v20 = vpack.c.bf16 %v491_v2, %v490_v1  ;;  %v520_v21 = vmul.f32 0.20019531, %v392_v5  ;;  %vm2134_vm2 = vcmp.ge.f32.partialorder %v392_v5, 0.0 }
  0x52   : > { %v812_v17 = vpack.c.b16 %v774_v0, %v772_v63  ;;  %v813_v18 = vpack.c.b16 %v775_v4, %v773_v3  ;;  %v521_v22 = vmul.f32 0.20019531, %v393_v6  ;;  %vm2138_vm3 = vcmp.ge.f32.partialorder %v393_v6, 0.0 }
  0x53   : > { %v607_v30 = vsel %vm575_vm1, %v319_v46, %v543_v20  ;;  %vm590_vm6 = vmpackc.low %vm2138_vm3, %vm2134_vm2  ;;  %v364_v43 = vunpack.c.l.bf16 %v320_v34  ;;  %v365_v44 = vunpack.c.h.bf16 %v320_v34  ;;  %v366_v45 = vunpack.c.l.bf16 %v321_v35 }
  0x54   : > { %v558_v31 = vpack.c.bf16 %v521_v22, %v520_v21  ;;  %v747_v40 = vunpack.c.h.b16 %v607_v30  ;;  %v367_v48 = vunpack.c.h.bf16 %v321_v35  ;;  %v397_v46 = vunpack.c.h.bf16 %v336_v33 }
  0x55   : > { %v398_v50 = vunpack.c.l.bf16 %v337_v36  ;;  %v399_v47 = vunpack.c.h.bf16 %v337_v36  ;;  %vm2162_vm8 = vcmp.ge.f32.partialorder %v364_v43, 0.0  ;;  %vm2166_vm9 = vcmp.ge.f32.partialorder %v365_v44, 0.0 }
  0x56   : > { %vm2170_vm10 = vcmp.ge.f32.partialorder %v366_v45, 0.0  ;;  %vm2174_vm11 = vcmp.ge.f32.partialorder %v367_v48, 0.0  ;;  %v492_v59 = vmul.f32 0.20019531, %v364_v43  ;;  %v493_v60 = vmul.f32 0.20019531, %v365_v44  ;;  %vm576_vm14 = vmpackc.low %vm2166_vm9, %vm2162_vm8 }
  0x57   : > { %v524_v63 = vmul.f32 0.20019531, %v396_v49  ;;  %v525_v0 = vmul.f32 0.20019531, %v397_v46  ;;  %v526_v3 = vmul.f32 0.20019531, %v398_v50  ;;  %v527_v4 = vmul.f32 0.20019531, %v399_v47  ;;  %vm577_vm1 = vmpackc.low %vm2174_vm11, %vm2170_vm10 }
  0x58   : > { %vm2182_vm13 = vcmp.ge.f32.partialorder %v397_v46, 0.0  ;;  %v799_v5 = vpack.c.b16 %v747_v40, %v745_v39  ;;  %vm2190_vm15 = vcmp.ge.f32.partialorder %v398_v50, 0.0  ;;  %vm2194_vm0 = vcmp.ge.f32.partialorder %v399_v47, 0.0 }
  0x59   : > { %v544_v11 = vpack.c.bf16 %v493_v60, %v492_v59  ;;  %vm592_vm2 = vmpackc.low %vm2182_vm13, %vm2178_vm12 }
  0x5a   : > { %vm593_vm3 = vmpackc.low %vm2194_vm0, %vm2190_vm15 }
  0x5b   : > { %v608_v15 = vsel %vm576_vm14, %v320_v34, %v544_v11 }
  0x5c   : > { %971 = vmatmul.bf16.gmra.mxu0 %v794_v37  ;;  %1011 = vmatmul.bf16.gmra.mxu2 %v810_v38  ;;  %v744_v37 = vunpack.c.l.b16 %v606_v29  ;;  %v746_v38 = vunpack.c.l.b16 %v607_v30  ;;  %v748_v19 = vunpack.c.l.b16 %v608_v15  ;;  %v749_v21 = vunpack.c.h.b16 %v608_v15  ;;  %v338_v29 = vld [vmem:[%s1790_s5 + $0xf0] sm:$0xff]  ;;  %v339_v30 = vld [vmem:[%s1790_s5 + $0xf8] sm:$0xff]  ;;  %s1484_s5 = sshll.u32 %s2465_s20, 2 }
  0x5d   : > { %1060 = vmatmul.bf16.gmra.mxu1 %v795_v41  ;;  %1100 = vmatmul.bf16.gmra.mxu3 %v811_v42  ;;  %v622_v41 = vsel %vm590_vm6, %v334_v61, %v558_v31  ;;  %v623_v42 = vsel %vm591_vm7, %v335_v62, %v559_v32  ;;  %v494_v61 = vmul.f32 0.20019531, %v366_v45  ;;  %v495_v62 = vmul.f32 0.20019531, %v367_v48  ;;  %s2273_s8 = scalar_lea.vmem %s2333_s3, %s1484_s5 }
  0x5e   : > { %v776_v51 = vunpack.c.l.b16 %v622_v41  ;;  %v778_v52 = vunpack.c.l.b16 %v623_v42  ;;  %v777_v53 = vunpack.c.h.b16 %v622_v41  ;;  %v779_v55 = vunpack.c.h.b16 %v623_v42 }
  0x5f   : > { %v798_v7 = vpack.c.b16 %v746_v38, %v744_v37  ;;  %v545_v12 = vpack.c.bf16 %v495_v62, %v494_v61  ;;  %v368_v31 = vunpack.c.l.bf16 %v322_v23  ;;  %v369_v32 = vunpack.c.h.bf16 %v322_v23 }
  0x60   : > { %v814_v8 = vpack.c.b16 %v778_v52, %v776_v51  ;;  %v815_v6 = vpack.c.b16 %v779_v55, %v777_v53  ;;  %v370_v37 = vunpack.c.l.bf16 %v323_v24  ;;  %v371_v38 = vunpack.c.h.bf16 %v323_v24 }
  0x61   : > { %v609_v16 = vsel %vm577_vm1, %v321_v35, %v545_v12  ;;  %v400_v34 = vunpack.c.l.bf16 %v338_v29  ;;  %v401_v35 = vunpack.c.h.bf16 %v338_v29  ;;  %vm2214_vm4 = vcmp.ge.f32.partialorder %v368_v31, 0.0 }
  0x62   : > { %v750_v20 = vunpack.c.l.b16 %v609_v16  ;;  %v751_v22 = vunpack.c.h.b16 %v609_v16  ;;  %vm2218_vm5 = vcmp.ge.f32.partialorder %v369_v32, 0.0  ;;  %vm2222_vm6 = vcmp.ge.f32.partialorder %v370_v37, 0.0 }
  0x63   : > { %vm2226_vm7 = vcmp.ge.f32.partialorder %v371_v38, 0.0  ;;  %v496_v49 = vmul.f32 0.20019531, %v368_v31  ;;  %v497_v46 = vmul.f32 0.20019531, %v369_v32  ;;  %v498_v50 = vmul.f32 0.20019531, %v370_v37  ;;  %vm578_vm10 = vmpackc.low %vm2218_vm5, %vm2214_vm4 }
  0x64   : > { %v800_v41 = vpack.c.b16 %v750_v20, %v748_v19  ;;  %v801_v39 = vpack.c.b16 %v751_v22, %v749_v21  ;;  %v499_v47 = vmul.f32 0.20019531, %v371_v38  ;;  %v528_v51 = vmul.f32 0.20019531, %v400_v34  ;;  %vm579_vm13 = vmpackc.low %vm2226_vm7, %vm2222_vm6 }
  0x65   : > { %v529_v52 = vmul.f32 0.20019531, %v401_v35  ;;  %vm2230_vm8 = vcmp.ge.f32.partialorder %v400_v34, 0.0  ;;  %vm2234_vm9 = vcmp.ge.f32.partialorder %v401_v35, 0.0  ;;  %v546_v59 = vpack.c.bf16 %v497_v46, %v496_v49 }
  0x66   : > { %v547_v60 = vpack.c.bf16 %v499_v47, %v498_v50  ;;  %vm594_vm14 = vmpackc.low %vm2234_vm9, %vm2230_vm8 }
  0x67   : > { %v562_v61 = vpack.c.bf16 %v529_v52, %v528_v51 }
  0x6c   : > { %976 = vmatmul.bf16.gmra.mxu0 %v796_v13  ;;  %1016 = vmatmul.bf16.gmra.mxu2 %v812_v17  ;;  %v560_v13 = vpack.c.bf16 %v525_v0, %v524_v63  ;;  %v610_v63 = vsel %vm578_vm10, %v322_v23, %v546_v59  ;;  %v611_v0 = vsel %vm579_vm13, %v323_v24, %v547_v60 }
  0x6d   : > { %1065 = vmatmul.bf16.gmra.mxu1 %v797_v14  ;;  %1105 = vmatmul.bf16.gmra.mxu3 %v813_v18  ;;  %v561_v14 = vpack.c.bf16 %v527_v4, %v526_v3  ;;  %v626_v3 = vsel %vm594_vm14, %v338_v29, %v562_v61 }
  0x6e   : > { %v624_v17 = vsel %vm592_vm2, %v336_v33, %v560_v13  ;;  %v402_v33 = vunpack.c.l.bf16 %v339_v30  ;;  %v784_v1 = vunpack.c.l.b16 %v626_v3  ;;  %v785_v9 = vunpack.c.h.b16 %v626_v3 }
  0x6f   : > { %v625_v18 = vsel %vm593_vm3, %v337_v36, %v561_v14  ;;  %v780_v25 = vunpack.c.l.b16 %v624_v17  ;;  %v781_v27 = vunpack.c.h.b16 %v624_v17  ;;  %v403_v36 = vunpack.c.h.bf16 %v339_v30 }
  0x70   : > { %v782_v26 = vunpack.c.l.b16 %v625_v18  ;;  %v783_v28 = vunpack.c.h.b16 %v625_v18  ;;  %v530_v53 = vmul.f32 0.20019531, %v402_v33  ;;  %vm2242_vm11 = vcmp.ge.f32.partialorder %v402_v33, 0.0  ;;  %v2265_v18 = vld [vmem:[%s2332_s2] ss:$0 sm:$0xff] }
  0x71   : > { %v531_v55 = vmul.f32 0.20019531, %v403_v36  ;;  %vm2246_vm12 = vcmp.ge.f32.partialorder %v403_v36, 0.0 }
  0x72   : > { %v816_v42 = vpack.c.b16 %v782_v26, %v780_v25  ;;  %v817_v40 = vpack.c.b16 %v783_v28, %v781_v27  ;;  %vm595_vm15 = vmpackc.low %vm2246_vm12, %vm2242_vm11 }
  0x73   : > { %v563_v62 = vpack.c.bf16 %v531_v55, %v530_v53 }
  0x75   : > { %v627_v4 = vsel %vm595_vm15, %v339_v30, %v563_v62 }
  0x76   : > { %v786_v2 = vunpack.c.l.b16 %v627_v4  ;;  %v787_v10 = vunpack.c.h.b16 %v627_v4 }
  0x78   : > { %v818_v12 = vpack.c.b16 %v786_v2, %v784_v1  ;;  %v819_v14 = vpack.c.b16 %v787_v10, %v785_v9 }
  0x7c   : > { %981 = vmatmul.bf16.gmra.mxu0 %v798_v7  ;;  %1021 = vmatmul.bf16.gmra.mxu2 %v814_v8  ;;  %v752_v7 = vunpack.c.l.b16 %v610_v63  ;;  %v754_v8 = vunpack.c.l.b16 %v611_v0 }
  0x7d   : > { %1070 = vmatmul.bf16.gmra.mxu1 %v799_v5  ;;  %1110 = vmatmul.bf16.gmra.mxu3 %v815_v6  ;;  %v753_v5 = vunpack.c.h.b16 %v610_v63  ;;  %v755_v6 = vunpack.c.h.b16 %v611_v0 }
  0x7e   : > { %v802_v11 = vpack.c.b16 %v754_v8, %v752_v7 }
  0x7f   : > { %v803_v13 = vpack.c.b16 %v755_v6, %v753_v5 }
  0x8c   : > { %986 = vmatmul.bf16.gmra.mxu0 %v800_v41  ;;  %1026 = vmatmul.bf16.gmra.mxu2 %v816_v42 }
  0x8d   : > { %1075 = vmatmul.bf16.gmra.mxu1 %v801_v39  ;;  %1115 = vmatmul.bf16.gmra.mxu3 %v817_v40 }
  0x9c   : > { %991 = vmatmul.bf16.gmra.mxu0 %v802_v11  ;;  %1031 = vmatmul.bf16.gmra.mxu2 %v818_v12 }
  0x9d   : > { %1080 = vmatmul.bf16.gmra.mxu1 %v803_v13  ;;  %1120 = vmatmul.bf16.gmra.mxu3 %v819_v14 }
  0xa9   : > { %v957_v15 = vpop.f32.mrf.mxu0 }
  0xaa   : > { %v1046_v16 = vpop.f32.mrf.mxu1 }
  0xab   : > { %v1047_v17 = vadd.f32 %v1046_v16, %v957_v15 }
  0xad   : > { %v1229_v23 = vadd.f32 %v2265_v18, %v1047_v17 }
  0xaf   : > { %v997_v19 = vpop.f32.mrf.mxu2  ;;  %v1261_v27 = vmax.f32 %v1229_v23, 0.0 }
  0xb0   : > { %v1086_v20 = vpop.f32.mrf.mxu3 }
  0xb1   : > { %v959_v21 = vpop.f32.mrf.mxu0  ;;  %v1087_v25 = vadd.f32 %v1086_v20, %v997_v19 }
  0xb2   : > { %v1048_v22 = vpop.f32.mrf.mxu1 }
  0xb3   : > { %v1049_v24 = vadd.f32 %v1048_v22, %v959_v21  ;;  %v1245_v31 = vadd.f32 %v2265_v18, %v1087_v25 }
  0xb5   : > { %v1230_v26 = vadd.f32 %v2265_v18, %v1049_v24  ;;  %v1277_v33 = vmax.f32 %v1245_v31, 0.0 }
  0xb7   : > { %v1262_v28 = vmax.f32 %v1230_v26, 0.0  ;;  %v999_v29 = vpop.f32.mrf.mxu2 }
  0xb8   : > { %v1088_v30 = vpop.f32.mrf.mxu3 }
  0xb9   : > { %v1571_v32 = vpack.c.bf16 %v1262_v28, %v1261_v27  ;;  %v1089_v37 = vadd.f32 %v1088_v30, %v999_v29  ;;  %v962_v38 = vpop.f32.mrf.mxu0 }
  0xba   : > { %v1051_v34 = vpop.f32.mrf.mxu1 }
  0xbb   : > { %1572 = vst [vmem:[%s2273_s8] sm:$0xff] %v1571_v32   ;;  %v1246_v35 = vadd.f32 %v2265_v18, %v1089_v37  ;;  %v1052_v42 = vadd.f32 %v1051_v34, %v962_v38 }
  0xbd   : > { %v1278_v36 = vmax.f32 %v1246_v35, 0.0  ;;  %v1231_v45 = vadd.f32 %v2265_v18, %v1052_v42 }
  0xbf   : > { %v1611_v41 = vpack.c.bf16 %v1278_v36, %v1277_v33  ;;  %v1002_v39 = vpop.f32.mrf.mxu2  ;;  %v1263_v50 = vmax.f32 %v1231_v45, 0.0 }
  0xc0   : > { %v1091_v40 = vpop.f32.mrf.mxu3 }
  0xc1   : > { %1655 = vst [vmem:[%s2273_s8 + $0x40] sm:$0xff] %v1611_v41   ;;  %v964_v43 = vpop.f32.mrf.mxu0  ;;  %v1092_v49 = vadd.f32 %v1091_v40, %v1002_v39 }
  0xc2   : > { %v1053_v44 = vpop.f32.mrf.mxu1 }
  0xc3   : > { %v1054_v48 = vadd.f32 %v1053_v44, %v964_v43  ;;  %v1247_v53 = vadd.f32 %v2265_v18, %v1092_v49 }
  0xc5   : > { %v1232_v46 = vadd.f32 %v2265_v18, %v1054_v48  ;;  %v1279_v59 = vmax.f32 %v1247_v53, 0.0 }
  0xc7   : > { %v1264_v47 = vmax.f32 %v1232_v46, 0.0  ;;  %v1004_v51 = vpop.f32.mrf.mxu2 }
  0xc8   : > { %v1093_v52 = vpop.f32.mrf.mxu3 }
  0xc9   : > { %v1576_v55 = vpack.c.bf16 %v1264_v47, %v1263_v50  ;;  %v1094_v54 = vadd.f32 %v1093_v52, %v1004_v51  ;;  %v967_v56 = vpop.f32.mrf.mxu0 }
  0xca   : > { %v1056_v57 = vpop.f32.mrf.mxu1 }
  0xcb   : > { %1648 = vst [vmem:[%s2273_s8 + $0x8] sm:$0xff] %v1576_v55   ;;  %v1248_v58 = vadd.f32 %v2265_v18, %v1094_v54  ;;  %v1057_v62 = vadd.f32 %v1056_v57, %v967_v56 }
  0xcd   : > { %v1280_v60 = vmax.f32 %v1248_v58, 0.0  ;;  %v1233_v7 = vadd.f32 %v2265_v18, %v1057_v62 }
  0xcf   : > { %v1616_v61 = vpack.c.bf16 %v1280_v60, %v1279_v59  ;;  %v1007_v63 = vpop.f32.mrf.mxu2  ;;  %v1265_v5 = vmax.f32 %v1233_v7, 0.0 }
  0xd0   : > { %v1096_v0 = vpop.f32.mrf.mxu3 }
  0xd1   : > { %1656 = vst [vmem:[%s2273_s8 + $0x48] sm:$0xff] %v1616_v61   ;;  %v969_v3 = vpop.f32.mrf.mxu0  ;;  %v1097_v1 = vadd.f32 %v1096_v0, %v1007_v63 }
  0xd2   : > { %v1058_v4 = vpop.f32.mrf.mxu1 }
  0xd3   : > { %v1059_v8 = vadd.f32 %v1058_v4, %v969_v3  ;;  %v1249_v11 = vadd.f32 %v2265_v18, %v1097_v1 }
  0xd5   : > { %v1234_v2 = vadd.f32 %v2265_v18, %v1059_v8  ;;  %v1281_v17 = vmax.f32 %v1249_v11, 0.0 }
  0xd7   : > { %v1266_v6 = vmax.f32 %v1234_v2, 0.0  ;;  %v1009_v9 = vpop.f32.mrf.mxu2 }
  0xd8   : > { %v1098_v10 = vpop.f32.mrf.mxu3 }
  0xd9   : > { %v1581_v12 = vpack.c.bf16 %v1266_v6, %v1265_v5  ;;  %v1099_v13 = vadd.f32 %v1098_v10, %v1009_v9  ;;  %v972_v14 = vpop.f32.mrf.mxu0 }
  0xda   : > { %v1061_v15 = vpop.f32.mrf.mxu1 }
  0xdb   : > { %1649 = vst [vmem:[%s2273_s8 + $0x10] sm:$0xff] %v1581_v12   ;;  %v1250_v16 = vadd.f32 %v2265_v18, %v1099_v13  ;;  %v1062_v21 = vadd.f32 %v1061_v15, %v972_v14 }
  0xdd   : > { %v1282_v19 = vmax.f32 %v1250_v16, 0.0  ;;  %v1235_v26 = vadd.f32 %v2265_v18, %v1062_v21 }
  0xdf   : > { %v1621_v20 = vpack.c.bf16 %v1282_v19, %v1281_v17  ;;  %v1012_v22 = vpop.f32.mrf.mxu2  ;;  %v1267_v30 = vmax.f32 %v1235_v26, 0.0 }
  0xe0   : > { %v1101_v23 = vpop.f32.mrf.mxu3 }
  0xe1   : > { %1657 = vst [vmem:[%s2273_s8 + $0x50] sm:$0xff] %v1621_v20   ;;  %v974_v24 = vpop.f32.mrf.mxu0  ;;  %v1102_v28 = vadd.f32 %v1101_v23, %v1012_v22 }
  0xe2   : > { %v1063_v25 = vpop.f32.mrf.mxu1 }
  0xe3   : > { %v1064_v27 = vadd.f32 %v1063_v25, %v974_v24  ;;  %v1251_v38 = vadd.f32 %v2265_v18, %v1102_v28 }
  0xe5   : > { %v1236_v29 = vadd.f32 %v2265_v18, %v1064_v27  ;;  %v1283_v42 = vmax.f32 %v1251_v38, 0.0 }
  0xe7   : > { %v1268_v31 = vmax.f32 %v1236_v29, 0.0  ;;  %v1014_v32 = vpop.f32.mrf.mxu2 }
  0xe8   : > { %v1103_v37 = vpop.f32.mrf.mxu3 }
  0xe9   : > { %v1586_v34 = vpack.c.bf16 %v1268_v31, %v1267_v30  ;;  %v1104_v35 = vadd.f32 %v1103_v37, %v1014_v32  ;;  %v977_v33 = vpop.f32.mrf.mxu0 }
  0xea   : > { %v1066_v36 = vpop.f32.mrf.mxu1 }
  0xeb   : > { %1650 = vst [vmem:[%s2273_s8 + $0x18] sm:$0xff] %v1586_v34   ;;  %v1252_v41 = vadd.f32 %v2265_v18, %v1104_v35  ;;  %v1067_v43 = vadd.f32 %v1066_v36, %v977_v33 }
  0xed   : > { %v1284_v39 = vmax.f32 %v1252_v41, 0.0  ;;  %v1237_v46 = vadd.f32 %v2265_v18, %v1067_v43 }
  0xef   : > { %v1626_v40 = vpack.c.bf16 %v1284_v39, %v1283_v42  ;;  %v1017_v44 = vpop.f32.mrf.mxu2  ;;  %v1269_v52 = vmax.f32 %v1237_v46, 0.0 }
  0xf0   : > { %v1106_v45 = vpop.f32.mrf.mxu3 }
  0xf1   : > { %1658 = vst [vmem:[%s2273_s8 + $0x58] sm:$0xff] %v1626_v40   ;;  %v979_v48 = vpop.f32.mrf.mxu0  ;;  %v1107_v47 = vadd.f32 %v1106_v45, %v1017_v44 }
  0xf2   : > { %v1068_v49 = vpop.f32.mrf.mxu1 }
  0xf3   : > { %v1069_v50 = vadd.f32 %v1068_v49, %v979_v48  ;;  %v1253_v56 = vadd.f32 %v2265_v18, %v1107_v47 }
  0xf5   : > { %v1238_v51 = vadd.f32 %v2265_v18, %v1069_v50  ;;  %v1285_v62 = vmax.f32 %v1253_v56, 0.0 }
  0xf7   : > { %v1270_v53 = vmax.f32 %v1238_v51, 0.0  ;;  %v1019_v55 = vpop.f32.mrf.mxu2 }
  0xf8   : > { %v1108_v54 = vpop.f32.mrf.mxu3 }
  0xf9   : > { %v1591_v57 = vpack.c.bf16 %v1270_v53, %v1269_v52  ;;  %v1109_v58 = vadd.f32 %v1108_v54, %v1019_v55  ;;  %v982_v59 = vpop.f32.mrf.mxu0 }
  0xfa   : > { %v1071_v60 = vpop.f32.mrf.mxu1 }
  0xfb   : > { %1651 = vst [vmem:[%s2273_s8 + $0x20] sm:$0xff] %v1591_v57   ;;  %v1254_v61 = vadd.f32 %v2265_v18, %v1109_v58  ;;  %v1072_v3 = vadd.f32 %v1071_v60, %v982_v59 }
  0xfd   : > { %v1286_v63 = vmax.f32 %v1254_v61, 0.0  ;;  %v1239_v2 = vadd.f32 %v2265_v18, %v1072_v3 }
  0xff   : > { %v1631_v0 = vpack.c.bf16 %v1286_v63, %v1285_v62  ;;  %v1022_v4 = vpop.f32.mrf.mxu2  ;;  %v1271_v10 = vmax.f32 %v1239_v2, 0.0 }
 0x100   : > { %v1111_v7 = vpop.f32.mrf.mxu3 }
 0x101   : > { %1659 = vst [vmem:[%s2273_s8 + $0x60] sm:$0xff] %v1631_v0   ;;  %v984_v8 = vpop.f32.mrf.mxu0  ;;  %v1112_v6 = vadd.f32 %v1111_v7, %v1022_v4 }
 0x102   : > { %v1073_v1 = vpop.f32.mrf.mxu1 }
 0x103   : > { %v1074_v5 = vadd.f32 %v1073_v1, %v984_v8  ;;  %v1255_v14 = vadd.f32 %v2265_v18, %v1112_v6 }
 0x105   : > { %v1240_v9 = vadd.f32 %v2265_v18, %v1074_v5  ;;  %v1287_v21 = vmax.f32 %v1255_v14, 0.0 }
 0x107   : > { %v1272_v11 = vmax.f32 %v1240_v9, 0.0  ;;  %v1024_v12 = vpop.f32.mrf.mxu2 }
 0x108   : > { %v1113_v13 = vpop.f32.mrf.mxu3 }
 0x109   : > { %v1596_v15 = vpack.c.bf16 %v1272_v11, %v1271_v10  ;;  %v1114_v16 = vadd.f32 %v1113_v13, %v1024_v12  ;;  %v987_v17 = vpop.f32.mrf.mxu0 }
 0x10a   : > { %v1076_v19 = vpop.f32.mrf.mxu1 }
 0x10b   : > { %1652 = vst [vmem:[%s2273_s8 + $0x28] sm:$0xff] %v1596_v15   ;;  %v1256_v20 = vadd.f32 %v2265_v18, %v1114_v16  ;;  %v1077_v24 = vadd.f32 %v1076_v19, %v987_v17 }
 0x10d   : > { %v1288_v22 = vmax.f32 %v1256_v20, 0.0  ;;  %v1241_v29 = vadd.f32 %v2265_v18, %v1077_v24 }
 0x10f   : > { %v1636_v23 = vpack.c.bf16 %v1288_v22, %v1287_v21  ;;  %v1027_v25 = vpop.f32.mrf.mxu2  ;;  %v1273_v37 = vmax.f32 %v1241_v29, 0.0 }
 0x110   : > { %v1116_v26 = vpop.f32.mrf.mxu3 }
 0x111   : > { %1660 = vst [vmem:[%s2273_s8 + $0x68] sm:$0xff] %v1636_v23   ;;  %v989_v27 = vpop.f32.mrf.mxu0  ;;  %v1117_v31 = vadd.f32 %v1116_v26, %v1027_v25 }
 0x112   : > { %v1078_v28 = vpop.f32.mrf.mxu1 }
 0x113   : > { %v1079_v30 = vadd.f32 %v1078_v28, %v989_v27  ;;  %v1257_v33 = vadd.f32 %v2265_v18, %v1117_v31 }
 0x115   : > { %v1242_v32 = vadd.f32 %v2265_v18, %v1079_v30  ;;  %v1289_v43 = vmax.f32 %v1257_v33, 0.0 }
 0x117   : > { %v1274_v38 = vmax.f32 %v1242_v32, 0.0  ;;  %v1029_v34 = vpop.f32.mrf.mxu2 }
 0x118   : > { %v1118_v35 = vpop.f32.mrf.mxu3 }
 0x119   : > { %v1601_v36 = vpack.c.bf16 %v1274_v38, %v1273_v37  ;;  %v1119_v41 = vadd.f32 %v1118_v35, %v1029_v34  ;;  %v992_v42 = vpop.f32.mrf.mxu0 }
 0x11a   : > { %v1081_v39 = vpop.f32.mrf.mxu1 }
 0x11b   : > { %1653 = vst [vmem:[%s2273_s8 + $0x30] sm:$0xff] %v1601_v36   ;;  %v1258_v40 = vadd.f32 %v2265_v18, %v1119_v41  ;;  %v1082_v48 = vadd.f32 %v1081_v39, %v992_v42 }
 0x11d   : > { %v1290_v44 = vmax.f32 %v1258_v40, 0.0  ;;  %v1243_v51 = vadd.f32 %v2265_v18, %v1082_v48 }
 0x11f   : > { %v1641_v45 = vpack.c.bf16 %v1290_v44, %v1289_v43  ;;  %v1032_v49 = vpop.f32.mrf.mxu2  ;;  %v1275_v54 = vmax.f32 %v1243_v51, 0.0 }
 0x120   : > { %v1121_v46 = vpop.f32.mrf.mxu3 }
 0x121   : > { %1661 = vst [vmem:[%s2273_s8 + $0x70] sm:$0xff] %v1641_v45   ;;  %v994_v50 = vpop.f32.mrf.mxu0  ;;  %v1122_v53 = vadd.f32 %v1121_v46, %v1032_v49 }
 0x122   : > { %v1083_v47 = vpop.f32.mrf.mxu1 }
 0x123   : > { %v1084_v52 = vadd.f32 %v1083_v47, %v994_v50  ;;  %v1259_v59 = vadd.f32 %v2265_v18, %v1122_v53 }
 0x125   : > { %v1244_v55 = vadd.f32 %v2265_v18, %v1084_v52  ;;  %v1291_v63 = vmax.f32 %v1259_v59, 0.0 }
 0x127   : > { %v1276_v56 = vmax.f32 %v1244_v55, 0.0  ;;  %v1034_v57 = vpop.f32.mrf.mxu2 }
 0x128   : > { %v1123_v58 = vpop.f32.mrf.mxu3 }
 0x129   : > { %v1606_v60 = vpack.c.bf16 %v1276_v56, %v1275_v54  ;;  %v1124_v61 = vadd.f32 %v1123_v58, %v1034_v57 }
 0x12b   : > { %1654 = vst [vmem:[%s2273_s8 + $0x38] sm:$0xff] %v1606_v60   ;;  %v1260_v62 = vadd.f32 %v2265_v18, %v1124_v61 }
 0x12d   : > { %v1292_v0 = vmax.f32 %v1260_v62, 0.0 }
 0x12f   : > { %v1646_v3 = vpack.c.bf16 %v1292_v0, %v1291_v63 }
 0x131   : > { %1662 = vst [vmem:[%s2273_s8 + $0x78] sm:$0xff] %v1646_v3  }
 0x132 PF: > { %s13_s14 = sadd.s32 1, %s1726_s14   ;;  %s2460_s12 = smov %s1722_s13 }
 0x133   : > { %p10_p5 = scmp.ge.s32.totalorder %s13_s14, 6   ;;  %s2461_s13 = smov %s2463_s15 }
 0x135   :  { %12 = sbr.rel (!%p10_p5) target bundleno = 2 (0x2), region = 73 }

// kernel: unet_block_innermost_forward.3
= control target key start
LH: loop header
LB: loop body
LE: loop exit
PB: predicated region body
PF: predicated region fallthrough
CT: control target
= control target key end

     0   :  { %s1155_s12 = smov 0   ;;  %s1157_s13 = smov 0   ;;  %s1319_s0 = inlined_call_operand.vmem [shape: bf16[8,1024,128], index: 0, kind: input, shape index: {}]   ;;  %s1320_s1 = inlined_call_operand.vmem [shape: bf16[8,128,128], index: 1, kind: input, shape index: {}]   ;;  %s1321_s2 = inlined_call_operand.vmem [shape: f32[1,128], index: 2, kind: input, shape index: {}]   ;;  %s1322_s3 = inlined_call_operand.vmem [shape: f32[8,1024,128], index: 3, kind: output, shape index: {}]  }
   0x1   :  { %s1159_s14 = smov 0   ;;  %s1161_s15 = smov 0  }
   0x2   :  { %s1163_s16 = smov 0  }
   0x3 LB: > { %s28_s17 = sadd.s32 1, %s1125_s14  ;;  %s32_s18 = sadd.s32 1, %s1129_s15  ;;  %s1133_s16 = sphi %s1163_s16, %s13_s16   ;;  %s1129_s15 = sphi %s1161_s15, %s1326_s15   ;;  %s1125_s14 = sphi %s1159_s14, %s1325_s14   ;;  %s1121_s13 = sphi %s1157_s13, %s1324_s13   ;;  %s1117_s12 = sphi %s1155_s12, %s1323_s12  }
   0x4   : > { %p30_p0 = scmp.ge.s32.totalorder %s28_s17, 4  ;;  %p898_p1 = scmp.ge.s32.totalorder %s1133_s16, 1 }
   0x5   : > { %p187_p2 = scmp.lt.s32.totalorder %s1133_s16, 33 }
   0x6   : > { %s1328_s17 = smov (%p30_p0, %s28_s17), 0  ;;  %s1330_s18 = smov (!%p30_p0, %s32_s18), %s1129_s15 }
   0x7   : > { %p188_p3 = pnand %p898_p1, %p187_p2  ;;  %p34_p4 = scmp.ge.s32.totalorder %s1330_s18, 8 }
   0x8   : > { %p232_p5 = scmp.lt.s32.totalorder (!%p188_p3), %s1121_s13, 7  ;;  %s899_s23 = sshll.u32 (!%p188_p3), %s1117_s12, 5 }
   0x9   : > { %s1332_s18 = smov (%p34_p4, %s1330_s18), 0  ;;  %191 = sbr.rel (%p188_p3) target bundleno = 242 (0xf2), region = 32 }
   0xa   : > { %p234_p6 = scmp.lt.s32.totalorder (!%p188_p3), %s899_s23, 127 }
   0xe   : > { %s1334_s13 = smov (!%p232_p5, %s1121_s13), 7  ;;  %s1336_s23 = smov (!%p234_p6, %s899_s23), 127  ;;  %v1233_v24 = vld [vmem:[%s1321_s2] ss:$0 sm:$0xff] }
   0xf   : > { %s1005_s19 = sshll.u32 %s1334_s13, 6  ;;  %s900_s24 = sshll.u32 %s1334_s13, 7 }
  0x10   : > { %s1193_s22 = scalar_lea.vmem %s1320_s1, %s1005_s19  ;;  %s1203_s25 = sadd.s32 %s900_s24, %s1336_s23 }
  0x11   : > { %v1029_v0 = vld [vmem:[%s1193_s22 + $0x38] sm:$0xff]  ;;  %v1028_v1 = vld [vmem:[%s1193_s22 + $0x30] sm:$0xff]  ;;  %v1027_v2 = vld [vmem:[%s1193_s22 + $0x28] sm:$0xff]  ;;  %s901_s26 = sshll.u32 %s1203_s25, 2  ;;  %s906_s30 = sshll.u32 %s1203_s25, 3 }
  0x12   : > { %524 = vmatpush.bf16.msra.mxu0 %v1029_v0  ;;  %1030 = vmatpush.bf16.msra.mxu1 %v1029_v0  ;;  %v1026_v3 = vld [vmem:[%s1193_s22 + $0x20] sm:$0xff]  ;;  %v1025_v4 = vld [vmem:[%s1193_s22 + $0x18] sm:$0xff]  ;;  %v1024_v5 = vld [vmem:[%s1193_s22 + $0x10] sm:$0xff]  ;;  %s1210_s29 = scalar_lea.vmem %s1319_s0, %s901_s26  ;;  %s1238_s8 = scalar_lea.vmem %s1322_s3, %s906_s30 }
  0x13   : > { %1031 = vmatpush.bf16.msra.mxu2 %v1029_v0  ;;  %1032 = vmatpush.bf16.msra.mxu3 %v1029_v0  ;;  %v1023_v6 = vld [vmem:[%s1193_s22 + $0x8] sm:$0xff]  ;;  %v1022_v7 = vld [vmem:[%s1193_s22] sm:$0xff]  ;;  %v1008_v16 = vld [vmem:[%s1210_s29 + $0x10] sm:$0xff] }
  0x14   : > { %v1006_v8 = vld [vmem:[%s1210_s29] sm:$0xff]  ;;  %v1007_v12 = vld [vmem:[%s1210_s29 + $0x8] sm:$0xff]  ;;  %v1012_v17 = vld [vmem:[%s1210_s29 + $0x30] sm:$0xff] }
  0x15   : > { %v1010_v9 = vld [vmem:[%s1210_s29 + $0x20] sm:$0xff]  ;;  %v1011_v13 = vld [vmem:[%s1210_s29 + $0x28] sm:$0xff]  ;;  %v1016_v18 = vld [vmem:[%s1210_s29 + $0x50] sm:$0xff] }
  0x16   : > { %525 = vmatpush.bf16.msra.mxu0 %v1028_v1  ;;  %1033 = vmatpush.bf16.msra.mxu1 %v1028_v1  ;;  %v1014_v10 = vld [vmem:[%s1210_s29 + $0x40] sm:$0xff]  ;;  %v1015_v14 = vld [vmem:[%s1210_s29 + $0x48] sm:$0xff]  ;;  %v1020_v19 = vld [vmem:[%s1210_s29 + $0x70] sm:$0xff] }
  0x17   : > { %1034 = vmatpush.bf16.msra.mxu2 %v1028_v1  ;;  %1035 = vmatpush.bf16.msra.mxu3 %v1028_v1  ;;  %v1018_v11 = vld [vmem:[%s1210_s29 + $0x60] sm:$0xff]  ;;  %v1019_v15 = vld [vmem:[%s1210_s29 + $0x68] sm:$0xff]  ;;  %v1009_v20 = vld [vmem:[%s1210_s29 + $0x18] sm:$0xff] }
  0x18   : > { %v1013_v21 = vld [vmem:[%s1210_s29 + $0x38] sm:$0xff] }
  0x19   : > { %v1017_v22 = vld [vmem:[%s1210_s29 + $0x58] sm:$0xff] }
  0x1a   : > { %526 = vmatpush.bf16.msra.mxu0 %v1027_v2  ;;  %1036 = vmatpush.bf16.msra.mxu1 %v1027_v2  ;;  %v1021_v23 = vld [vmem:[%s1210_s29 + $0x78] sm:$0xff] }
  0x1b   : > { %1037 = vmatpush.bf16.msra.mxu2 %v1027_v2  ;;  %1038 = vmatpush.bf16.msra.mxu3 %v1027_v2 }
  0x1e   : > { %527 = vmatpush.bf16.msra.mxu0 %v1026_v3  ;;  %1039 = vmatpush.bf16.msra.mxu1 %v1026_v3 }
  0x1f   : > { %1040 = vmatpush.bf16.msra.mxu2 %v1026_v3  ;;  %1041 = vmatpush.bf16.msra.mxu3 %v1026_v3 }
  0x22   : > { %528 = vmatpush.bf16.msra.mxu0 %v1025_v4  ;;  %1042 = vmatpush.bf16.msra.mxu1 %v1025_v4 }
  0x23   : > { %1043 = vmatpush.bf16.msra.mxu2 %v1025_v4  ;;  %1044 = vmatpush.bf16.msra.mxu3 %v1025_v4 }
  0x26   : > { %529 = vmatpush.bf16.msra.mxu0 %v1024_v5  ;;  %1045 = vmatpush.bf16.msra.mxu1 %v1024_v5 }
  0x27   : > { %1046 = vmatpush.bf16.msra.mxu2 %v1024_v5  ;;  %1047 = vmatpush.bf16.msra.mxu3 %v1024_v5 }
  0x2a   : > { %530 = vmatpush.bf16.msra.mxu0 %v1023_v6  ;;  %1048 = vmatpush.bf16.msra.mxu1 %v1023_v6 }
  0x2b   : > { %1049 = vmatpush.bf16.msra.mxu2 %v1023_v6  ;;  %1050 = vmatpush.bf16.msra.mxu3 %v1023_v6 }
  0x2e   : > { %531 = vmatpush.bf16.msra.mxu0 %v1022_v7  ;;  %1051 = vmatpush.bf16.msra.mxu1 %v1022_v7 }
  0x2f   : > { %1052 = vmatpush.bf16.msra.mxu2 %v1022_v7  ;;  %1053 = vmatpush.bf16.msra.mxu3 %v1022_v7 }
  0x31   : > { %532 = vmatmul.bf16.vlgmr.msra.gmra.mxu0 %v1006_v8  ;;  %552 = vmatmul.bf16.vlgmr.msra.gmra.mxu1 %v1010_v9 }
  0x32   : > { %572 = vmatmul.bf16.vlgmr.msra.gmra.mxu2 %v1014_v10  ;;  %592 = vmatmul.bf16.vlgmr.msra.gmra.mxu3 %v1018_v11 }
  0x41   : > { %537 = vmatmul.bf16.gmra.mxu0 %v1007_v12  ;;  %557 = vmatmul.bf16.gmra.mxu1 %v1011_v13 }
  0x42   : > { %577 = vmatmul.bf16.gmra.mxu2 %v1015_v14  ;;  %597 = vmatmul.bf16.gmra.mxu3 %v1019_v15 }
  0x51   : > { %542 = vmatmul.bf16.gmra.mxu0 %v1008_v16  ;;  %562 = vmatmul.bf16.gmra.mxu1 %v1012_v17 }
  0x52   : > { %582 = vmatmul.bf16.gmra.mxu2 %v1016_v18  ;;  %602 = vmatmul.bf16.gmra.mxu3 %v1020_v19 }
  0x61   : > { %547 = vmatmul.bf16.gmra.mxu0 %v1009_v20  ;;  %567 = vmatmul.bf16.gmra.mxu1 %v1013_v21 }
  0x62   : > { %587 = vmatmul.bf16.gmra.mxu2 %v1017_v22  ;;  %607 = vmatmul.bf16.gmra.mxu3 %v1021_v23 }
  0xae   : > { %v533_v25 = vpop.f32.mrf.mxu0  ;;  %v553_v26 = vpop.f32.mrf.mxu1 }
  0xaf   : > { %v716_v27 = vadd.f32 %v1233_v24, %v533_v25  ;;  %v724_v28 = vadd.f32 %v1233_v24, %v553_v26 }
  0xb1   : > { %748 = vst [vmem:[%s1238_s8] sm:$0xff] %v716_v27 }
  0xb2   : > { %756 = vst [vmem:[%s1238_s8 + $0x40] sm:$0xff] %v724_v28 }
  0xb5   : > { %v573_v29 = vpop.f32.mrf.mxu2  ;;  %v593_v30 = vpop.f32.mrf.mxu3 }
  0xb6   : > { %v732_v31 = vadd.f32 %v1233_v24, %v573_v29  ;;  %v740_v32 = vadd.f32 %v1233_v24, %v593_v30  ;;  %v535_v33 = vpop.f32.mrf.mxu0  ;;  %v555_v34 = vpop.f32.mrf.mxu1 }
  0xb7   : > { %v717_v35 = vadd.f32 %v1233_v24, %v535_v33  ;;  %v725_v36 = vadd.f32 %v1233_v24, %v555_v34 }
  0xb8   : > { %764 = vst [vmem:[%s1238_s8 + $0x80] sm:$0xff] %v732_v31 }
  0xb9   : > { %772 = vst [vmem:[%s1238_s8 + $0xc0] sm:$0xff] %v740_v32 }
  0xba   : > { %749 = vst [vmem:[%s1238_s8 + $0x8] sm:$0xff] %v717_v35 }
  0xbb   : > { %757 = vst [vmem:[%s1238_s8 + $0x48] sm:$0xff] %v725_v36 }
  0xbd   : > { %v575_v37 = vpop.f32.mrf.mxu2  ;;  %v595_v38 = vpop.f32.mrf.mxu3 }
  0xbe   : > { %v733_v39 = vadd.f32 %v1233_v24, %v575_v37  ;;  %v741_v40 = vadd.f32 %v1233_v24, %v595_v38  ;;  %v538_v41 = vpop.f32.mrf.mxu0  ;;  %v558_v42 = vpop.f32.mrf.mxu1 }
  0xbf   : > { %v718_v43 = vadd.f32 %v1233_v24, %v538_v41  ;;  %v726_v44 = vadd.f32 %v1233_v24, %v558_v42 }
  0xc0   : > { %765 = vst [vmem:[%s1238_s8 + $0x88] sm:$0xff] %v733_v39 }
  0xc1   : > { %773 = vst [vmem:[%s1238_s8 + $0xc8] sm:$0xff] %v741_v40 }
  0xc2   : > { %750 = vst [vmem:[%s1238_s8 + $0x10] sm:$0xff] %v718_v43 }
  0xc3   : > { %758 = vst [vmem:[%s1238_s8 + $0x50] sm:$0xff] %v726_v44 }
  0xc5   : > { %v578_v45 = vpop.f32.mrf.mxu2  ;;  %v598_v46 = vpop.f32.mrf.mxu3 }
  0xc6   : > { %v734_v47 = vadd.f32 %v1233_v24, %v578_v45  ;;  %v742_v48 = vadd.f32 %v1233_v24, %v598_v46  ;;  %v540_v49 = vpop.f32.mrf.mxu0  ;;  %v560_v50 = vpop.f32.mrf.mxu1 }
  0xc7   : > { %v719_v51 = vadd.f32 %v1233_v24, %v540_v49  ;;  %v727_v52 = vadd.f32 %v1233_v24, %v560_v50 }
  0xc8   : > { %766 = vst [vmem:[%s1238_s8 + $0x90] sm:$0xff] %v734_v47 }
  0xc9   : > { %774 = vst [vmem:[%s1238_s8 + $0xd0] sm:$0xff] %v742_v48 }
  0xca   : > { %751 = vst [vmem:[%s1238_s8 + $0x18] sm:$0xff] %v719_v51 }
  0xcb   : > { %759 = vst [vmem:[%s1238_s8 + $0x58] sm:$0xff] %v727_v52 }
  0xcd   : > { %v580_v53 = vpop.f32.mrf.mxu2  ;;  %v600_v54 = vpop.f32.mrf.mxu3 }
  0xce   : > { %v735_v55 = vadd.f32 %v1233_v24, %v580_v53  ;;  %v743_v56 = vadd.f32 %v1233_v24, %v600_v54  ;;  %v543_v57 = vpop.f32.mrf.mxu0  ;;  %v563_v58 = vpop.f32.mrf.mxu1 }
  0xcf   : > { %v720_v59 = vadd.f32 %v1233_v24, %v543_v57  ;;  %v728_v60 = vadd.f32 %v1233_v24, %v563_v58 }
  0xd0   : > { %767 = vst [vmem:[%s1238_s8 + $0x98] sm:$0xff] %v735_v55 }
  0xd1   : > { %775 = vst [vmem:[%s1238_s8 + $0xd8] sm:$0xff] %v743_v56 }
  0xd2   : > { %752 = vst [vmem:[%s1238_s8 + $0x20] sm:$0xff] %v720_v59 }
  0xd3   : > { %760 = vst [vmem:[%s1238_s8 + $0x60] sm:$0xff] %v728_v60 }
  0xd5   : > { %v583_v61 = vpop.f32.mrf.mxu2  ;;  %v603_v62 = vpop.f32.mrf.mxu3 }
  0xd6   : > { %v736_v63 = vadd.f32 %v1233_v24, %v583_v61  ;;  %v744_v0 = vadd.f32 %v1233_v24, %v603_v62  ;;  %v545_v1 = vpop.f32.mrf.mxu0  ;;  %v565_v2 = vpop.f32.mrf.mxu1 }
  0xd7   : > { %v721_v3 = vadd.f32 %v1233_v24, %v545_v1  ;;  %v729_v4 = vadd.f32 %v1233_v24, %v565_v2 }
  0xd8   : > { %768 = vst [vmem:[%s1238_s8 + $0xa0] sm:$0xff] %v736_v63 }
  0xd9   : > { %776 = vst [vmem:[%s1238_s8 + $0xe0] sm:$0xff] %v744_v0 }
  0xda   : > { %753 = vst [vmem:[%s1238_s8 + $0x28] sm:$0xff] %v721_v3 }
  0xdb   : > { %761 = vst [vmem:[%s1238_s8 + $0x68] sm:$0xff] %v729_v4 }
  0xdd   : > { %v585_v5 = vpop.f32.mrf.mxu2  ;;  %v605_v6 = vpop.f32.mrf.mxu3 }
  0xde   : > { %v737_v7 = vadd.f32 %v1233_v24, %v585_v5  ;;  %v745_v8 = vadd.f32 %v1233_v24, %v605_v6  ;;  %v548_v9 = vpop.f32.mrf.mxu0  ;;  %v568_v10 = vpop.f32.mrf.mxu1 }
  0xdf   : > { %v722_v11 = vadd.f32 %v1233_v24, %v548_v9  ;;  %v730_v12 = vadd.f32 %v1233_v24, %v568_v10 }
  0xe0   : > { %769 = vst [vmem:[%s1238_s8 + $0xa8] sm:$0xff] %v737_v7 }
  0xe1   : > { %777 = vst [vmem:[%s1238_s8 + $0xe8] sm:$0xff] %v745_v8 }
  0xe2   : > { %754 = vst [vmem:[%s1238_s8 + $0x30] sm:$0xff] %v722_v11 }
  0xe3   : > { %762 = vst [vmem:[%s1238_s8 + $0x70] sm:$0xff] %v730_v12 }
  0xe5   : > { %v588_v13 = vpop.f32.mrf.mxu2  ;;  %v608_v14 = vpop.f32.mrf.mxu3 }
  0xe6   : > { %v738_v15 = vadd.f32 %v1233_v24, %v588_v13  ;;  %v746_v16 = vadd.f32 %v1233_v24, %v608_v14  ;;  %v550_v17 = vpop.f32.mrf.mxu0  ;;  %v570_v18 = vpop.f32.mrf.mxu1 }
  0xe7   : > { %v723_v19 = vadd.f32 %v1233_v24, %v550_v17  ;;  %v731_v20 = vadd.f32 %v1233_v24, %v570_v18 }
  0xe8   : > { %770 = vst [vmem:[%s1238_s8 + $0xb0] sm:$0xff] %v738_v15 }
  0xe9   : > { %778 = vst [vmem:[%s1238_s8 + $0xf0] sm:$0xff] %v746_v16 }
  0xea   : > { %755 = vst [vmem:[%s1238_s8 + $0x38] sm:$0xff] %v723_v19 }
  0xeb   : > { %763 = vst [vmem:[%s1238_s8 + $0x78] sm:$0xff] %v731_v20 }
  0xed   : > { %v590_v21 = vpop.f32.mrf.mxu2  ;;  %v610_v22 = vpop.f32.mrf.mxu3 }
  0xee   : > { %v739_v23 = vadd.f32 %v1233_v24, %v590_v21  ;;  %v747_v25 = vadd.f32 %v1233_v24, %v610_v22 }
  0xf0   : > { %771 = vst [vmem:[%s1238_s8 + $0xb8] sm:$0xff] %v739_v23 }
  0xf1   : > { %779 = vst [vmem:[%s1238_s8 + $0xf8] sm:$0xff] %v747_v25 }
  0xf2 PF: > { %s13_s16 = sadd.s32 1, %s1133_s16   ;;  %s1323_s12 = smov %s1125_s14 }
  0xf3   : > { %p10_p7 = scmp.ge.s32.totalorder %s13_s16, 34   ;;  %s1324_s13 = smov %s1129_s15 }
  0xf4   : > { %s1325_s14 = smov %s1328_s17  ;;  %s1326_s15 = smov %s1332_s18 }
  0xf5   :  { %12 = sbr.rel (!%p10_p7) target bundleno = 3 (0x3), region = 73 }

</bundles_post_ra>
